<compile_context>
chip_gen: v7x
topology: tpu7x:2x2x1
jax: 0.10.0
libtpu: 0.0.40
codegen_flags: <defaults>
</compile_context>

<pallas_src>
import math

import jax
import jax.numpy as jnp
from jax.experimental import pallas as pl
from jax.experimental.pallas import tpu as pltpu

# Small, module-consistent shapes.
B, S, D, H, F = 2, 8, 32, 4, 64        # batch, seq, d_model, heads, ffn hidden
NUM_LAYERS = 2
DH = D // H
EPS = 1e-5
NEG = -1e9


def _decoder_kernel(x_ref, mask_ref,
                    wq_ref, bq_ref, wk_ref, bk_ref, wv_ref, bv_ref,
                    wo_ref, bo_ref, ln1g_ref, ln1b_ref,
                    w1_ref, b1_ref, w2_ref, b2_ref,
                    ln2g_ref, ln2b_ref, out_ref):
    # ---- Hoisted loads: read once from VMEM, shared by every fused layer
    # ---- (deepcopy semantics => identical per-layer params).
    xf = x_ref[...]                          # (B*S, D) activations, batch flattened
    mask = mask_ref[...]                     # (B*S, B*S) additive mask:
                                             #   causal + key-padding + cross-batch block
    wq, bq = wq_ref[...], bq_ref[...]        # Wq/bq pre-scaled by 1/sqrt(DH)
    wk, bk = wk_ref[...], bk_ref[...]
    wv, bv = wv_ref[...], bv_ref[...]
    wo, bo = wo_ref[...], bo_ref[...]
    g1, be1 = ln1g_ref[...], ln1b_ref[...]
    w1, b1 = w1_ref[...], b1_ref[...]
    w2, b2 = w2_ref[...], b2_ref[...]
    g2, be2 = ln2g_ref[...], ln2b_ref[...]

    # Per-head 0/1 column masks over the D lanes (hoisted, computed once).
    lane = jax.lax.broadcasted_iota(jnp.int32, (1, D), 1)
    head_masks = [((lane >= h * DH) & (lane < (h + 1) * DH)).astype(jnp.float32)
                  for h in range(H)]

    def layernorm(y, g, b):
        mu = jnp.mean(y, axis=-1, keepdims=True)
        var = jnp.mean(jnp.square(y - mu), axis=-1, keepdims=True)
        return (y - mu) * jax.lax.rsqrt(var + EPS) * g + b

    # Static unrolled layer loop (NUM_LAYERS = 2).  Use lax.fori_loop carrying xf
    # for deeper stacks to bound vreg live ranges.
    for _ in range(NUM_LAYERS):
        # Three lane-contiguous projections (no fused-QKV lane-offset slicing).
        q = jnp.dot(xf, wq, preferred_element_type=jnp.float32) + bq   # pre-scaled
        k = jnp.dot(xf, wk, preferred_element_type=jnp.float32) + bk
        v = jnp.dot(xf, wv, preferred_element_type=jnp.float32) + bv

        # Multi-head attention with NO lane extracts / concatenates and NO batch
        # loop: head h is selected by the 0/1 column mask; cross-batch attention
        # is killed by the additive mask.
        ctx = jnp.zeros_like(xf)                                       # (B*S, D)
        for h in range(H):                                             # static, H = 4
            hm = head_masks[h]                                         # (1, D)
            # scores = (q masked to head h) @ k^T   -> (B*S, B*S)
            s = jax.lax.dot_general(q * hm, k, (((1,), (1,)), ((), ())),
                                    preferred_element_type=jnp.float32)
            s = s + mask
            s = s - jnp.max(s, axis=-1, keepdims=True)
            p = jnp.exp(s)
            p = p * pl.reciprocal(jnp.sum(p, axis=-1, keepdims=True), approx=True)
            # head-h context lands only in head-h columns of (B*S, D); sum assembles
            # the full context (heads partition the columns) -> no concatenation.
            ctx = ctx + jnp.dot(p, v * hm, preferred_element_type=jnp.float32)

        # Single output projection per layer on the flattened context.
        attn = jnp.dot(ctx, wo, preferred_element_type=jnp.float32) + bo

        # Post-LN residual blocks (norm_first=False), ReLU FFN.
        y = layernorm(xf + attn, g1, be1)
        h1 = jnp.maximum(jnp.dot(y, w1, preferred_element_type=jnp.float32) + b1, 0.0)
        h2 = jnp.dot(h1, w2, preferred_element_type=jnp.float32) + b2
        xf = layernorm(y + h2, g2, be2)

    out_ref[...] = xf.astype(out_ref.dtype)


@jax.jit
def decoder_forward(x, attention_mask, padding_mask, params):
    """Decoder.forward: NUM_LAYERS identical layers fused into ONE pallas_call."""
    # Combined additive mask over the flattened (B*S) query/key axes:
    #   same-batch block: causal attention_mask + key-padding bias
    #   cross-batch block: -1e9 (so the in-kernel batch flattening stays correct).
    pad_bias = jnp.where(padding_mask, NEG, 0.0).astype(jnp.float32)            # (B, S)
    within = attention_mask.astype(jnp.float32)[None, :, :] + pad_bias[:, None, :]  # (B,S,S)
    full = jnp.full((B, S, B, S), NEG, dtype=jnp.float32)
    bidx = jnp.arange(B)
    full = full.at[bidx, :, bidx, :].set(within)          # fill diagonal blocks
    combined = full.reshape(B * S, B * S)                 # (B*S, B*S)

    xf = x.reshape(B * S, D)   # flatten batch: bigger matmul tiles, no batch grid

    n_inputs = 2 + len(params)
    vmem_spec = lambda: pl.BlockSpec(memory_space=pltpu.MemorySpace.VMEM)
    out = pl.pallas_call(
        _decoder_kernel,
        out_shape=jax.ShapeDtypeStruct((B * S, D), x.dtype),
        # Whole working set (<100 KiB) resident in VMEM on every TPU generation
        # (incl. v7x's 64 MiB); explicit VMEM placement, no grid.
        in_specs=[vmem_spec() for _ in range(n_inputs)],
        out_specs=vmem_spec(),
    )(xf, combined, *params)
    return out.reshape(B, S, D)


def init_layer_params(key):
    """Deterministic init for one decoder layer (shared by all layers), pre-packed
    for the kernel: separate Wq/Wk/Wv with 1/sqrt(DH) folded into Wq/bq."""
    ks = jax.random.split(key, 6)

    def w(k, shape):
        return jax.random.normal(k, shape, jnp.float32) * 0.02

    scale = 1.0 / math.sqrt(DH)
    wq = w(ks[0], (D, D)) * scale                 # attention scale folded in
    wk = w(ks[1], (D, D))
    wv = w(ks[2], (D, D))
    wo = w(ks[3], (D, D))
    bq = jnp.zeros((1, D), jnp.float32)           # (scaled) zero bias
    bk = jnp.zeros((1, D), jnp.float32)
    bv = jnp.zeros((1, D), jnp.float32)
    bo = jnp.zeros((1, D), jnp.float32)

    ln1g, ln1b = jnp.ones((1, D), jnp.float32), jnp.zeros((1, D), jnp.float32)
    w1, b1 = w(ks[4], (D, F)), jnp.zeros((1, F), jnp.float32)
    w2, b2 = w(ks[5], (F, D)), jnp.zeros((1, D), jnp.float32)
    ln2g, ln2b = jnp.ones((1, D), jnp.float32), jnp.zeros((1, D), jnp.float32)
    return [wq, bq, wk, bk, wv, bv, wo, bo,
            ln1g, ln1b, w1, b1, w2, b2, ln2g, ln2b]


if __name__ == "__main__":
    key = jax.random.PRNGKey(0)
    kx, kp = jax.random.split(key)

    x = jax.random.normal(kx, (B, S, D), jnp.float32)
    # Causal additive attention mask [S, S].
    attention_mask = jnp.where(jnp.tril(jnp.ones((S, S), bool)),
                               0.0, NEG).astype(jnp.float32)
    # Key-padding mask [B, S]: last two positions are padded (True = pad).
    padding_mask = jnp.zeros((B, S), bool).at[:, S - 2:].set(True)

    params = init_layer_params(kp)   # one copy, shared by all layers (deepcopy semantics)

    out = decoder_forward(x, attention_mask, padding_mask, params)
    out = jax.block_until_ready(out)
    assert out.shape == (B, S, D) and out.dtype == jnp.float32
    assert bool(jnp.all(jnp.isfinite(out)))
    print("KERNEL_OK")
</pallas_src>

<mosaic_0001>
module attributes {stable_mosaic.version = 11 : i64} {
  func.func @_decoder_kernel(%arg0: memref<16x32xf32, #tpu.memory_space<vmem>>, %arg1: memref<16x16xf32, #tpu.memory_space<vmem>>, %arg2: memref<32x32xf32, #tpu.memory_space<vmem>>, %arg3: memref<1x32xf32, #tpu.memory_space<vmem>>, %arg4: memref<32x32xf32, #tpu.memory_space<vmem>>, %arg5: memref<1x32xf32, #tpu.memory_space<vmem>>, %arg6: memref<32x32xf32, #tpu.memory_space<vmem>>, %arg7: memref<1x32xf32, #tpu.memory_space<vmem>>, %arg8: memref<32x32xf32, #tpu.memory_space<vmem>>, %arg9: memref<1x32xf32, #tpu.memory_space<vmem>>, %arg10: memref<1x32xf32, #tpu.memory_space<vmem>>, %arg11: memref<1x32xf32, #tpu.memory_space<vmem>>, %arg12: memref<32x64xf32, #tpu.memory_space<vmem>>, %arg13: memref<1x64xf32, #tpu.memory_space<vmem>>, %arg14: memref<64x32xf32, #tpu.memory_space<vmem>>, %arg15: memref<1x32xf32, #tpu.memory_space<vmem>>, %arg16: memref<1x32xf32, #tpu.memory_space<vmem>>, %arg17: memref<1x32xf32, #tpu.memory_space<vmem>>, %arg18: memref<16x32xf32, #tpu.memory_space<vmem>>) attributes {dimension_semantics = [], scalar_prefetch = 0 : i64, scratch_operands = 0 : i64, tpu.core_type = #tpu.core_type<tc>} {
    %c0 = arith.constant 0 : index
    %c0_0 = arith.constant 0 : index
    %0 = vector.load %arg0[%c0, %c0_0] : memref<16x32xf32, #tpu.memory_space<vmem>>, vector<16x32xf32>
    %c0_1 = arith.constant 0 : index
    %c0_2 = arith.constant 0 : index
    %1 = vector.load %arg1[%c0_1, %c0_2] : memref<16x16xf32, #tpu.memory_space<vmem>>, vector<16x16xf32>
    %c0_3 = arith.constant 0 : index
    %c0_4 = arith.constant 0 : index
    %2 = vector.load %arg2[%c0_3, %c0_4] : memref<32x32xf32, #tpu.memory_space<vmem>>, vector<32x32xf32>
    %c0_5 = arith.constant 0 : index
    %c0_6 = arith.constant 0 : index
    %3 = vector.load %arg3[%c0_5, %c0_6] : memref<1x32xf32, #tpu.memory_space<vmem>>, vector<1x32xf32>
    %c0_7 = arith.constant 0 : index
    %c0_8 = arith.constant 0 : index
    %4 = vector.load %arg4[%c0_7, %c0_8] : memref<32x32xf32, #tpu.memory_space<vmem>>, vector<32x32xf32>
    %c0_9 = arith.constant 0 : index
    %c0_10 = arith.constant 0 : index
    %5 = vector.load %arg5[%c0_9, %c0_10] : memref<1x32xf32, #tpu.memory_space<vmem>>, vector<1x32xf32>
    %c0_11 = arith.constant 0 : index
    %c0_12 = arith.constant 0 : index
    %6 = vector.load %arg6[%c0_11, %c0_12] : memref<32x32xf32, #tpu.memory_space<vmem>>, vector<32x32xf32>
    %c0_13 = arith.constant 0 : index
    %c0_14 = arith.constant 0 : index
    %7 = vector.load %arg7[%c0_13, %c0_14] : memref<1x32xf32, #tpu.memory_space<vmem>>, vector<1x32xf32>
    %c0_15 = arith.constant 0 : index
    %c0_16 = arith.constant 0 : index
    %8 = vector.load %arg8[%c0_15, %c0_16] : memref<32x32xf32, #tpu.memory_space<vmem>>, vector<32x32xf32>
    %c0_17 = arith.constant 0 : index
    %c0_18 = arith.constant 0 : index
    %9 = vector.load %arg9[%c0_17, %c0_18] : memref<1x32xf32, #tpu.memory_space<vmem>>, vector<1x32xf32>
    %c0_19 = arith.constant 0 : index
    %c0_20 = arith.constant 0 : index
    %10 = vector.load %arg10[%c0_19, %c0_20] : memref<1x32xf32, #tpu.memory_space<vmem>>, vector<1x32xf32>
    %c0_21 = arith.constant 0 : index
    %c0_22 = arith.constant 0 : index
    %11 = vector.load %arg11[%c0_21, %c0_22] : memref<1x32xf32, #tpu.memory_space<vmem>>, vector<1x32xf32>
    %c0_23 = arith.constant 0 : index
    %c0_24 = arith.constant 0 : index
    %12 = vector.load %arg12[%c0_23, %c0_24] : memref<32x64xf32, #tpu.memory_space<vmem>>, vector<32x64xf32>
    %c0_25 = arith.constant 0 : index
    %c0_26 = arith.constant 0 : index
    %13 = vector.load %arg13[%c0_25, %c0_26] : memref<1x64xf32, #tpu.memory_space<vmem>>, vector<1x64xf32>
    %c0_27 = arith.constant 0 : index
    %c0_28 = arith.constant 0 : index
    %14 = vector.load %arg14[%c0_27, %c0_28] : memref<64x32xf32, #tpu.memory_space<vmem>>, vector<64x32xf32>
    %c0_29 = arith.constant 0 : index
    %c0_30 = arith.constant 0 : index
    %15 = vector.load %arg15[%c0_29, %c0_30] : memref<1x32xf32, #tpu.memory_space<vmem>>, vector<1x32xf32>
    %c0_31 = arith.constant 0 : index
    %c0_32 = arith.constant 0 : index
    %16 = vector.load %arg16[%c0_31, %c0_32] : memref<1x32xf32, #tpu.memory_space<vmem>>, vector<1x32xf32>
    %c0_33 = arith.constant 0 : index
    %c0_34 = arith.constant 0 : index
    %17 = vector.load %arg17[%c0_33, %c0_34] : memref<1x32xf32, #tpu.memory_space<vmem>>, vector<1x32xf32>
    %18 = tpu.iota {dimensions = array<i32: 1>} : vector<1x32xi32>
    %c0_i32 = arith.constant 0 : i32
    %19 = vector.broadcast %c0_i32 : i32 to vector<1x32xi32>
    %20 = arith.cmpi sge, %18, %19 : vector<1x32xi32>
    %c8_i32 = arith.constant 8 : i32
    %21 = vector.broadcast %c8_i32 : i32 to vector<1x32xi32>
    %22 = arith.cmpi slt, %18, %21 : vector<1x32xi32>
    %23 = arith.andi %20, %22 : vector<1x32xi1>
    %24 = arith.extui %23 : vector<1x32xi1> to vector<1x32xi32>
    %25 = arith.sitofp %24 : vector<1x32xi32> to vector<1x32xf32>
    %c8_i32_35 = arith.constant 8 : i32
    %26 = vector.broadcast %c8_i32_35 : i32 to vector<1x32xi32>
    %27 = arith.cmpi sge, %18, %26 : vector<1x32xi32>
    %c16_i32 = arith.constant 16 : i32
    %28 = vector.broadcast %c16_i32 : i32 to vector<1x32xi32>
    %29 = arith.cmpi slt, %18, %28 : vector<1x32xi32>
    %30 = arith.andi %27, %29 : vector<1x32xi1>
    %31 = arith.extui %30 : vector<1x32xi1> to vector<1x32xi32>
    %32 = arith.sitofp %31 : vector<1x32xi32> to vector<1x32xf32>
    %c16_i32_36 = arith.constant 16 : i32
    %33 = vector.broadcast %c16_i32_36 : i32 to vector<1x32xi32>
    %34 = arith.cmpi sge, %18, %33 : vector<1x32xi32>
    %c24_i32 = arith.constant 24 : i32
    %35 = vector.broadcast %c24_i32 : i32 to vector<1x32xi32>
    %36 = arith.cmpi slt, %18, %35 : vector<1x32xi32>
    %37 = arith.andi %34, %36 : vector<1x32xi1>
    %38 = arith.extui %37 : vector<1x32xi1> to vector<1x32xi32>
    %39 = arith.sitofp %38 : vector<1x32xi32> to vector<1x32xf32>
    %c24_i32_37 = arith.constant 24 : i32
    %40 = vector.broadcast %c24_i32_37 : i32 to vector<1x32xi32>
    %41 = arith.cmpi sge, %18, %40 : vector<1x32xi32>
    %c32_i32 = arith.constant 32 : i32
    %42 = vector.broadcast %c32_i32 : i32 to vector<1x32xi32>
    %43 = arith.cmpi slt, %18, %42 : vector<1x32xi32>
    %44 = arith.andi %41, %43 : vector<1x32xi1>
    %45 = arith.extui %44 : vector<1x32xi1> to vector<1x32xi32>
    %46 = arith.sitofp %45 : vector<1x32xi32> to vector<1x32xf32>
    %cst = arith.constant dense<0.000000e+00> : vector<16x32xf32>
    %47 = tpu.matmul %0, %2, %cst {dimension_numbers = #tpu.dot_dimension_numbers<[1], [0], [0], [1], [0, 0, 1, 1], [], []>} : vector<16x32xf32>, vector<32x32xf32>, vector<16x32xf32> -> vector<16x32xf32>
    %48 = vector.broadcast %3 : vector<1x32xf32> to vector<16x32xf32>
    %49 = arith.addf %47, %48 : vector<16x32xf32>
    %cst_38 = arith.constant dense<0.000000e+00> : vector<16x32xf32>
    %50 = tpu.matmul %0, %4, %cst_38 {dimension_numbers = #tpu.dot_dimension_numbers<[1], [0], [0], [1], [0, 0, 1, 1], [], []>} : vector<16x32xf32>, vector<32x32xf32>, vector<16x32xf32> -> vector<16x32xf32>
    %51 = vector.broadcast %5 : vector<1x32xf32> to vector<16x32xf32>
    %52 = arith.addf %50, %51 : vector<16x32xf32>
    %cst_39 = arith.constant dense<0.000000e+00> : vector<16x32xf32>
    %53 = tpu.matmul %0, %6, %cst_39 {dimension_numbers = #tpu.dot_dimension_numbers<[1], [0], [0], [1], [0, 0, 1, 1], [], []>} : vector<16x32xf32>, vector<32x32xf32>, vector<16x32xf32> -> vector<16x32xf32>
    %54 = vector.broadcast %7 : vector<1x32xf32> to vector<16x32xf32>
    %55 = arith.addf %53, %54 : vector<16x32xf32>
    %cst_40 = arith.constant 0.000000e+00 : f32
    %56 = vector.broadcast %cst_40 : f32 to vector<16x32xf32>
    %57 = vector.broadcast %25 : vector<1x32xf32> to vector<16x32xf32>
    %58 = arith.mulf %49, %57 : vector<16x32xf32>
    %cst_41 = arith.constant dense<0.000000e+00> : vector<16x16xf32>
    %59 = tpu.matmul %58, %52, %cst_41 {dimension_numbers = #tpu.dot_dimension_numbers<[1], [1], [0], [0], [0, 0, 1, 0], [], []>} : vector<16x32xf32>, vector<16x32xf32>, vector<16x16xf32> -> vector<16x16xf32>
    %60 = arith.addf %59, %1 : vector<16x16xf32>
    %cst_42 = arith.constant dense<0xFF800000> : vector<16xf32>
    %61 = vector.multi_reduction <maximumf>, %60, %cst_42 [1] : vector<16x16xf32> to vector<16xf32>
    %62 = vector.shape_cast %61 : vector<16xf32> to vector<16x1xf32>
    %63 = vector.broadcast %62 : vector<16x1xf32> to vector<16x16xf32>
    %64 = arith.subf %60, %63 : vector<16x16xf32>
    %65 = math.exp %64 : vector<16x16xf32>
    %cst_43 = arith.constant dense<0.000000e+00> : vector<16xf32>
    %66 = vector.multi_reduction <add>, %65, %cst_43 [1] : vector<16x16xf32> to vector<16xf32>
    %67 = vector.shape_cast %66 : vector<16xf32> to vector<16x1xf32>
    %68 = tpu.reciprocal %67 {approx = true} : vector<16x1xf32> -> vector<16x1xf32>
    %69 = vector.broadcast %68 : vector<16x1xf32> to vector<16x16xf32>
    %70 = arith.mulf %65, %69 : vector<16x16xf32>
    %71 = vector.broadcast %25 : vector<1x32xf32> to vector<16x32xf32>
    %72 = arith.mulf %55, %71 : vector<16x32xf32>
    %cst_44 = arith.constant dense<0.000000e+00> : vector<16x32xf32>
    %73 = tpu.matmul %70, %72, %cst_44 {dimension_numbers = #tpu.dot_dimension_numbers<[1], [0], [0], [1], [0, 0, 1, 1], [], []>} : vector<16x16xf32>, vector<16x32xf32>, vector<16x32xf32> -> vector<16x32xf32>
    %74 = arith.addf %56, %73 : vector<16x32xf32>
    %75 = vector.broadcast %32 : vector<1x32xf32> to vector<16x32xf32>
    %76 = arith.mulf %49, %75 : vector<16x32xf32>
    %cst_45 = arith.constant dense<0.000000e+00> : vector<16x16xf32>
    %77 = tpu.matmul %76, %52, %cst_45 {dimension_numbers = #tpu.dot_dimension_numbers<[1], [1], [0], [0], [0, 0, 1, 0], [], []>} : vector<16x32xf32>, vector<16x32xf32>, vector<16x16xf32> -> vector<16x16xf32>
    %78 = arith.addf %77, %1 : vector<16x16xf32>
    %cst_46 = arith.constant dense<0xFF800000> : vector<16xf32>
    %79 = vector.multi_reduction <maximumf>, %78, %cst_46 [1] : vector<16x16xf32> to vector<16xf32>
    %80 = vector.shape_cast %79 : vector<16xf32> to vector<16x1xf32>
    %81 = vector.broadcast %80 : vector<16x1xf32> to vector<16x16xf32>
    %82 = arith.subf %78, %81 : vector<16x16xf32>
    %83 = math.exp %82 : vector<16x16xf32>
    %cst_47 = arith.constant dense<0.000000e+00> : vector<16xf32>
    %84 = vector.multi_reduction <add>, %83, %cst_47 [1] : vector<16x16xf32> to vector<16xf32>
    %85 = vector.shape_cast %84 : vector<16xf32> to vector<16x1xf32>
    %86 = tpu.reciprocal %85 {approx = true} : vector<16x1xf32> -> vector<16x1xf32>
    %87 = vector.broadcast %86 : vector<16x1xf32> to vector<16x16xf32>
    %88 = arith.mulf %83, %87 : vector<16x16xf32>
    %89 = vector.broadcast %32 : vector<1x32xf32> to vector<16x32xf32>
    %90 = arith.mulf %55, %89 : vector<16x32xf32>
    %cst_48 = arith.constant dense<0.000000e+00> : vector<16x32xf32>
    %91 = tpu.matmul %88, %90, %cst_48 {dimension_numbers = #tpu.dot_dimension_numbers<[1], [0], [0], [1], [0, 0, 1, 1], [], []>} : vector<16x16xf32>, vector<16x32xf32>, vector<16x32xf32> -> vector<16x32xf32>
    %92 = arith.addf %74, %91 : vector<16x32xf32>
    %93 = vector.broadcast %39 : vector<1x32xf32> to vector<16x32xf32>
    %94 = arith.mulf %49, %93 : vector<16x32xf32>
    %cst_49 = arith.constant dense<0.000000e+00> : vector<16x16xf32>
    %95 = tpu.matmul %94, %52, %cst_49 {dimension_numbers = #tpu.dot_dimension_numbers<[1], [1], [0], [0], [0, 0, 1, 0], [], []>} : vector<16x32xf32>, vector<16x32xf32>, vector<16x16xf32> -> vector<16x16xf32>
    %96 = arith.addf %95, %1 : vector<16x16xf32>
    %cst_50 = arith.constant dense<0xFF800000> : vector<16xf32>
    %97 = vector.multi_reduction <maximumf>, %96, %cst_50 [1] : vector<16x16xf32> to vector<16xf32>
    %98 = vector.shape_cast %97 : vector<16xf32> to vector<16x1xf32>
    %99 = vector.broadcast %98 : vector<16x1xf32> to vector<16x16xf32>
    %100 = arith.subf %96, %99 : vector<16x16xf32>
    %101 = math.exp %100 : vector<16x16xf32>
    %cst_51 = arith.constant dense<0.000000e+00> : vector<16xf32>
    %102 = vector.multi_reduction <add>, %101, %cst_51 [1] : vector<16x16xf32> to vector<16xf32>
    %103 = vector.shape_cast %102 : vector<16xf32> to vector<16x1xf32>
    %104 = tpu.reciprocal %103 {approx = true} : vector<16x1xf32> -> vector<16x1xf32>
    %105 = vector.broadcast %104 : vector<16x1xf32> to vector<16x16xf32>
    %106 = arith.mulf %101, %105 : vector<16x16xf32>
    %107 = vector.broadcast %39 : vector<1x32xf32> to vector<16x32xf32>
    %108 = arith.mulf %55, %107 : vector<16x32xf32>
    %cst_52 = arith.constant dense<0.000000e+00> : vector<16x32xf32>
    %109 = tpu.matmul %106, %108, %cst_52 {dimension_numbers = #tpu.dot_dimension_numbers<[1], [0], [0], [1], [0, 0, 1, 1], [], []>} : vector<16x16xf32>, vector<16x32xf32>, vector<16x32xf32> -> vector<16x32xf32>
    %110 = arith.addf %92, %109 : vector<16x32xf32>
    %111 = vector.broadcast %46 : vector<1x32xf32> to vector<16x32xf32>
    %112 = arith.mulf %49, %111 : vector<16x32xf32>
    %cst_53 = arith.constant dense<0.000000e+00> : vector<16x16xf32>
    %113 = tpu.matmul %112, %52, %cst_53 {dimension_numbers = #tpu.dot_dimension_numbers<[1], [1], [0], [0], [0, 0, 1, 0], [], []>} : vector<16x32xf32>, vector<16x32xf32>, vector<16x16xf32> -> vector<16x16xf32>
    %114 = arith.addf %113, %1 : vector<16x16xf32>
    %cst_54 = arith.constant dense<0xFF800000> : vector<16xf32>
    %115 = vector.multi_reduction <maximumf>, %114, %cst_54 [1] : vector<16x16xf32> to vector<16xf32>
    %116 = vector.shape_cast %115 : vector<16xf32> to vector<16x1xf32>
    %117 = vector.broadcast %116 : vector<16x1xf32> to vector<16x16xf32>
    %118 = arith.subf %114, %117 : vector<16x16xf32>
    %119 = math.exp %118 : vector<16x16xf32>
    %cst_55 = arith.constant dense<0.000000e+00> : vector<16xf32>
    %120 = vector.multi_reduction <add>, %119, %cst_55 [1] : vector<16x16xf32> to vector<16xf32>
    %121 = vector.shape_cast %120 : vector<16xf32> to vector<16x1xf32>
    %122 = tpu.reciprocal %121 {approx = true} : vector<16x1xf32> -> vector<16x1xf32>
    %123 = vector.broadcast %122 : vector<16x1xf32> to vector<16x16xf32>
    %124 = arith.mulf %119, %123 : vector<16x16xf32>
    %125 = vector.broadcast %46 : vector<1x32xf32> to vector<16x32xf32>
    %126 = arith.mulf %55, %125 : vector<16x32xf32>
    %cst_56 = arith.constant dense<0.000000e+00> : vector<16x32xf32>
    %127 = tpu.matmul %124, %126, %cst_56 {dimension_numbers = #tpu.dot_dimension_numbers<[1], [0], [0], [1], [0, 0, 1, 1], [], []>} : vector<16x16xf32>, vector<16x32xf32>, vector<16x32xf32> -> vector<16x32xf32>
    %128 = arith.addf %110, %127 : vector<16x32xf32>
    %cst_57 = arith.constant dense<0.000000e+00> : vector<16x32xf32>
    %129 = tpu.matmul %128, %8, %cst_57 {dimension_numbers = #tpu.dot_dimension_numbers<[1], [0], [0], [1], [0, 0, 1, 1], [], []>} : vector<16x32xf32>, vector<32x32xf32>, vector<16x32xf32> -> vector<16x32xf32>
    %130 = vector.broadcast %9 : vector<1x32xf32> to vector<16x32xf32>
    %131 = arith.addf %129, %130 : vector<16x32xf32>
    %132 = arith.addf %0, %131 : vector<16x32xf32>
    %cst_58 = arith.constant dense<0.000000e+00> : vector<16xf32>
    %133 = vector.multi_reduction <add>, %132, %cst_58 [1] : vector<16x32xf32> to vector<16xf32>
    %134 = vector.shape_cast %133 : vector<16xf32> to vector<16x1xf32>
    %cst_59 = arith.constant 3.200000e+01 : f32
    %135 = vector.broadcast %cst_59 : f32 to vector<16x1xf32>
    %136 = arith.divf %134, %135 : vector<16x1xf32>
    %137 = vector.broadcast %136 : vector<16x1xf32> to vector<16x32xf32>
    %138 = arith.subf %132, %137 : vector<16x32xf32>
    %139 = arith.mulf %138, %138 : vector<16x32xf32>
    %cst_60 = arith.constant dense<0.000000e+00> : vector<16xf32>
    %140 = vector.multi_reduction <add>, %139, %cst_60 [1] : vector<16x32xf32> to vector<16xf32>
    %141 = vector.shape_cast %140 : vector<16xf32> to vector<16x1xf32>
    %cst_61 = arith.constant 3.200000e+01 : f32
    %142 = vector.broadcast %cst_61 : f32 to vector<16x1xf32>
    %143 = arith.divf %141, %142 : vector<16x1xf32>
    %144 = vector.broadcast %136 : vector<16x1xf32> to vector<16x32xf32>
    %145 = arith.subf %132, %144 : vector<16x32xf32>
    %cst_62 = arith.constant 9.99999974E-6 : f32
    %146 = vector.broadcast %cst_62 : f32 to vector<16x1xf32>
    %147 = arith.addf %143, %146 : vector<16x1xf32>
    %148 = math.rsqrt %147 : vector<16x1xf32>
    %149 = vector.broadcast %148 : vector<16x1xf32> to vector<16x32xf32>
    %150 = arith.mulf %145, %149 : vector<16x32xf32>
    %151 = vector.broadcast %10 : vector<1x32xf32> to vector<16x32xf32>
    %152 = arith.mulf %150, %151 : vector<16x32xf32>
    %153 = vector.broadcast %11 : vector<1x32xf32> to vector<16x32xf32>
    %154 = arith.addf %152, %153 : vector<16x32xf32>
    %cst_63 = arith.constant dense<0.000000e+00> : vector<16x64xf32>
    %155 = tpu.matmul %154, %12, %cst_63 {dimension_numbers = #tpu.dot_dimension_numbers<[1], [0], [0], [1], [0, 0, 1, 1], [], []>} : vector<16x32xf32>, vector<32x64xf32>, vector<16x64xf32> -> vector<16x64xf32>
    %156 = vector.broadcast %13 : vector<1x64xf32> to vector<16x64xf32>
    %157 = arith.addf %155, %156 : vector<16x64xf32>
    %cst_64 = arith.constant 0.000000e+00 : f32
    %158 = vector.broadcast %cst_64 : f32 to vector<16x64xf32>
    %159 = arith.maximumf %157, %158 : vector<16x64xf32>
    %cst_65 = arith.constant dense<0.000000e+00> : vector<16x32xf32>
    %160 = tpu.matmul %159, %14, %cst_65 {dimension_numbers = #tpu.dot_dimension_numbers<[1], [0], [0], [1], [0, 0, 1, 1], [], []>} : vector<16x64xf32>, vector<64x32xf32>, vector<16x32xf32> -> vector<16x32xf32>
    %161 = vector.broadcast %15 : vector<1x32xf32> to vector<16x32xf32>
    %162 = arith.addf %160, %161 : vector<16x32xf32>
    %163 = arith.addf %154, %162 : vector<16x32xf32>
    %cst_66 = arith.constant dense<0.000000e+00> : vector<16xf32>
    %164 = vector.multi_reduction <add>, %163, %cst_66 [1] : vector<16x32xf32> to vector<16xf32>
    %165 = vector.shape_cast %164 : vector<16xf32> to vector<16x1xf32>
    %cst_67 = arith.constant 3.200000e+01 : f32
    %166 = vector.broadcast %cst_67 : f32 to vector<16x1xf32>
    %167 = arith.divf %165, %166 : vector<16x1xf32>
    %168 = vector.broadcast %167 : vector<16x1xf32> to vector<16x32xf32>
    %169 = arith.subf %163, %168 : vector<16x32xf32>
    %170 = arith.mulf %169, %169 : vector<16x32xf32>
    %cst_68 = arith.constant dense<0.000000e+00> : vector<16xf32>
    %171 = vector.multi_reduction <add>, %170, %cst_68 [1] : vector<16x32xf32> to vector<16xf32>
    %172 = vector.shape_cast %171 : vector<16xf32> to vector<16x1xf32>
    %cst_69 = arith.constant 3.200000e+01 : f32
    %173 = vector.broadcast %cst_69 : f32 to vector<16x1xf32>
    %174 = arith.divf %172, %173 : vector<16x1xf32>
    %175 = vector.broadcast %167 : vector<16x1xf32> to vector<16x32xf32>
    %176 = arith.subf %163, %175 : vector<16x32xf32>
    %cst_70 = arith.constant 9.99999974E-6 : f32
    %177 = vector.broadcast %cst_70 : f32 to vector<16x1xf32>
    %178 = arith.addf %174, %177 : vector<16x1xf32>
    %179 = math.rsqrt %178 : vector<16x1xf32>
    %180 = vector.broadcast %179 : vector<16x1xf32> to vector<16x32xf32>
    %181 = arith.mulf %176, %180 : vector<16x32xf32>
    %182 = vector.broadcast %16 : vector<1x32xf32> to vector<16x32xf32>
    %183 = arith.mulf %181, %182 : vector<16x32xf32>
    %184 = vector.broadcast %17 : vector<1x32xf32> to vector<16x32xf32>
    %185 = arith.addf %183, %184 : vector<16x32xf32>
    %cst_71 = arith.constant dense<0.000000e+00> : vector<16x32xf32>
    %186 = tpu.matmul %185, %2, %cst_71 {dimension_numbers = #tpu.dot_dimension_numbers<[1], [0], [0], [1], [0, 0, 1, 1], [], []>} : vector<16x32xf32>, vector<32x32xf32>, vector<16x32xf32> -> vector<16x32xf32>
    %187 = vector.broadcast %3 : vector<1x32xf32> to vector<16x32xf32>
    %188 = arith.addf %186, %187 : vector<16x32xf32>
    %cst_72 = arith.constant dense<0.000000e+00> : vector<16x32xf32>
    %189 = tpu.matmul %185, %4, %cst_72 {dimension_numbers = #tpu.dot_dimension_numbers<[1], [0], [0], [1], [0, 0, 1, 1], [], []>} : vector<16x32xf32>, vector<32x32xf32>, vector<16x32xf32> -> vector<16x32xf32>
    %190 = vector.broadcast %5 : vector<1x32xf32> to vector<16x32xf32>
    %191 = arith.addf %189, %190 : vector<16x32xf32>
    %cst_73 = arith.constant dense<0.000000e+00> : vector<16x32xf32>
    %192 = tpu.matmul %185, %6, %cst_73 {dimension_numbers = #tpu.dot_dimension_numbers<[1], [0], [0], [1], [0, 0, 1, 1], [], []>} : vector<16x32xf32>, vector<32x32xf32>, vector<16x32xf32> -> vector<16x32xf32>
    %193 = vector.broadcast %7 : vector<1x32xf32> to vector<16x32xf32>
    %194 = arith.addf %192, %193 : vector<16x32xf32>
    %cst_74 = arith.constant 0.000000e+00 : f32
    %195 = vector.broadcast %cst_74 : f32 to vector<16x32xf32>
    %196 = vector.broadcast %25 : vector<1x32xf32> to vector<16x32xf32>
    %197 = arith.mulf %188, %196 : vector<16x32xf32>
    %cst_75 = arith.constant dense<0.000000e+00> : vector<16x16xf32>
    %198 = tpu.matmul %197, %191, %cst_75 {dimension_numbers = #tpu.dot_dimension_numbers<[1], [1], [0], [0], [0, 0, 1, 0], [], []>} : vector<16x32xf32>, vector<16x32xf32>, vector<16x16xf32> -> vector<16x16xf32>
    %199 = arith.addf %198, %1 : vector<16x16xf32>
    %cst_76 = arith.constant dense<0xFF800000> : vector<16xf32>
    %200 = vector.multi_reduction <maximumf>, %199, %cst_76 [1] : vector<16x16xf32> to vector<16xf32>
    %201 = vector.shape_cast %200 : vector<16xf32> to vector<16x1xf32>
    %202 = vector.broadcast %201 : vector<16x1xf32> to vector<16x16xf32>
    %203 = arith.subf %199, %202 : vector<16x16xf32>
    %204 = math.exp %203 : vector<16x16xf32>
    %cst_77 = arith.constant dense<0.000000e+00> : vector<16xf32>
    %205 = vector.multi_reduction <add>, %204, %cst_77 [1] : vector<16x16xf32> to vector<16xf32>
    %206 = vector.shape_cast %205 : vector<16xf32> to vector<16x1xf32>
    %207 = tpu.reciprocal %206 {approx = true} : vector<16x1xf32> -> vector<16x1xf32>
    %208 = vector.broadcast %207 : vector<16x1xf32> to vector<16x16xf32>
    %209 = arith.mulf %204, %208 : vector<16x16xf32>
    %210 = vector.broadcast %25 : vector<1x32xf32> to vector<16x32xf32>
    %211 = arith.mulf %194, %210 : vector<16x32xf32>
    %cst_78 = arith.constant dense<0.000000e+00> : vector<16x32xf32>
    %212 = tpu.matmul %209, %211, %cst_78 {dimension_numbers = #tpu.dot_dimension_numbers<[1], [0], [0], [1], [0, 0, 1, 1], [], []>} : vector<16x16xf32>, vector<16x32xf32>, vector<16x32xf32> -> vector<16x32xf32>
    %213 = arith.addf %195, %212 : vector<16x32xf32>
    %214 = vector.broadcast %32 : vector<1x32xf32> to vector<16x32xf32>
    %215 = arith.mulf %188, %214 : vector<16x32xf32>
    %cst_79 = arith.constant dense<0.000000e+00> : vector<16x16xf32>
    %216 = tpu.matmul %215, %191, %cst_79 {dimension_numbers = #tpu.dot_dimension_numbers<[1], [1], [0], [0], [0, 0, 1, 0], [], []>} : vector<16x32xf32>, vector<16x32xf32>, vector<16x16xf32> -> vector<16x16xf32>
    %217 = arith.addf %216, %1 : vector<16x16xf32>
    %cst_80 = arith.constant dense<0xFF800000> : vector<16xf32>
    %218 = vector.multi_reduction <maximumf>, %217, %cst_80 [1] : vector<16x16xf32> to vector<16xf32>
    %219 = vector.shape_cast %218 : vector<16xf32> to vector<16x1xf32>
    %220 = vector.broadcast %219 : vector<16x1xf32> to vector<16x16xf32>
    %221 = arith.subf %217, %220 : vector<16x16xf32>
    %222 = math.exp %221 : vector<16x16xf32>
    %cst_81 = arith.constant dense<0.000000e+00> : vector<16xf32>
    %223 = vector.multi_reduction <add>, %222, %cst_81 [1] : vector<16x16xf32> to vector<16xf32>
    %224 = vector.shape_cast %223 : vector<16xf32> to vector<16x1xf32>
    %225 = tpu.reciprocal %224 {approx = true} : vector<16x1xf32> -> vector<16x1xf32>
    %226 = vector.broadcast %225 : vector<16x1xf32> to vector<16x16xf32>
    %227 = arith.mulf %222, %226 : vector<16x16xf32>
    %228 = vector.broadcast %32 : vector<1x32xf32> to vector<16x32xf32>
    %229 = arith.mulf %194, %228 : vector<16x32xf32>
    %cst_82 = arith.constant dense<0.000000e+00> : vector<16x32xf32>
    %230 = tpu.matmul %227, %229, %cst_82 {dimension_numbers = #tpu.dot_dimension_numbers<[1], [0], [0], [1], [0, 0, 1, 1], [], []>} : vector<16x16xf32>, vector<16x32xf32>, vector<16x32xf32> -> vector<16x32xf32>
    %231 = arith.addf %213, %230 : vector<16x32xf32>
    %232 = vector.broadcast %39 : vector<1x32xf32> to vector<16x32xf32>
    %233 = arith.mulf %188, %232 : vector<16x32xf32>
    %cst_83 = arith.constant dense<0.000000e+00> : vector<16x16xf32>
    %234 = tpu.matmul %233, %191, %cst_83 {dimension_numbers = #tpu.dot_dimension_numbers<[1], [1], [0], [0], [0, 0, 1, 0], [], []>} : vector<16x32xf32>, vector<16x32xf32>, vector<16x16xf32> -> vector<16x16xf32>
    %235 = arith.addf %234, %1 : vector<16x16xf32>
    %cst_84 = arith.constant dense<0xFF800000> : vector<16xf32>
    %236 = vector.multi_reduction <maximumf>, %235, %cst_84 [1] : vector<16x16xf32> to vector<16xf32>
    %237 = vector.shape_cast %236 : vector<16xf32> to vector<16x1xf32>
    %238 = vector.broadcast %237 : vector<16x1xf32> to vector<16x16xf32>
    %239 = arith.subf %235, %238 : vector<16x16xf32>
    %240 = math.exp %239 : vector<16x16xf32>
    %cst_85 = arith.constant dense<0.000000e+00> : vector<16xf32>
    %241 = vector.multi_reduction <add>, %240, %cst_85 [1] : vector<16x16xf32> to vector<16xf32>
    %242 = vector.shape_cast %241 : vector<16xf32> to vector<16x1xf32>
    %243 = tpu.reciprocal %242 {approx = true} : vector<16x1xf32> -> vector<16x1xf32>
    %244 = vector.broadcast %243 : vector<16x1xf32> to vector<16x16xf32>
    %245 = arith.mulf %240, %244 : vector<16x16xf32>
    %246 = vector.broadcast %39 : vector<1x32xf32> to vector<16x32xf32>
    %247 = arith.mulf %194, %246 : vector<16x32xf32>
    %cst_86 = arith.constant dense<0.000000e+00> : vector<16x32xf32>
    %248 = tpu.matmul %245, %247, %cst_86 {dimension_numbers = #tpu.dot_dimension_numbers<[1], [0], [0], [1], [0, 0, 1, 1], [], []>} : vector<16x16xf32>, vector<16x32xf32>, vector<16x32xf32> -> vector<16x32xf32>
    %249 = arith.addf %231, %248 : vector<16x32xf32>
    %250 = vector.broadcast %46 : vector<1x32xf32> to vector<16x32xf32>
    %251 = arith.mulf %188, %250 : vector<16x32xf32>
    %cst_87 = arith.constant dense<0.000000e+00> : vector<16x16xf32>
    %252 = tpu.matmul %251, %191, %cst_87 {dimension_numbers = #tpu.dot_dimension_numbers<[1], [1], [0], [0], [0, 0, 1, 0], [], []>} : vector<16x32xf32>, vector<16x32xf32>, vector<16x16xf32> -> vector<16x16xf32>
    %253 = arith.addf %252, %1 : vector<16x16xf32>
    %cst_88 = arith.constant dense<0xFF800000> : vector<16xf32>
    %254 = vector.multi_reduction <maximumf>, %253, %cst_88 [1] : vector<16x16xf32> to vector<16xf32>
    %255 = vector.shape_cast %254 : vector<16xf32> to vector<16x1xf32>
    %256 = vector.broadcast %255 : vector<16x1xf32> to vector<16x16xf32>
    %257 = arith.subf %253, %256 : vector<16x16xf32>
    %258 = math.exp %257 : vector<16x16xf32>
    %cst_89 = arith.constant dense<0.000000e+00> : vector<16xf32>
    %259 = vector.multi_reduction <add>, %258, %cst_89 [1] : vector<16x16xf32> to vector<16xf32>
    %260 = vector.shape_cast %259 : vector<16xf32> to vector<16x1xf32>
    %261 = tpu.reciprocal %260 {approx = true} : vector<16x1xf32> -> vector<16x1xf32>
    %262 = vector.broadcast %261 : vector<16x1xf32> to vector<16x16xf32>
    %263 = arith.mulf %258, %262 : vector<16x16xf32>
    %264 = vector.broadcast %46 : vector<1x32xf32> to vector<16x32xf32>
    %265 = arith.mulf %194, %264 : vector<16x32xf32>
    %cst_90 = arith.constant dense<0.000000e+00> : vector<16x32xf32>
    %266 = tpu.matmul %263, %265, %cst_90 {dimension_numbers = #tpu.dot_dimension_numbers<[1], [0], [0], [1], [0, 0, 1, 1], [], []>} : vector<16x16xf32>, vector<16x32xf32>, vector<16x32xf32> -> vector<16x32xf32>
    %267 = arith.addf %249, %266 : vector<16x32xf32>
    %cst_91 = arith.constant dense<0.000000e+00> : vector<16x32xf32>
    %268 = tpu.matmul %267, %8, %cst_91 {dimension_numbers = #tpu.dot_dimension_numbers<[1], [0], [0], [1], [0, 0, 1, 1], [], []>} : vector<16x32xf32>, vector<32x32xf32>, vector<16x32xf32> -> vector<16x32xf32>
    %269 = vector.broadcast %9 : vector<1x32xf32> to vector<16x32xf32>
    %270 = arith.addf %268, %269 : vector<16x32xf32>
    %271 = arith.addf %185, %270 : vector<16x32xf32>
    %cst_92 = arith.constant dense<0.000000e+00> : vector<16xf32>
    %272 = vector.multi_reduction <add>, %271, %cst_92 [1] : vector<16x32xf32> to vector<16xf32>
    %273 = vector.shape_cast %272 : vector<16xf32> to vector<16x1xf32>
    %cst_93 = arith.constant 3.200000e+01 : f32
    %274 = vector.broadcast %cst_93 : f32 to vector<16x1xf32>
    %275 = arith.divf %273, %274 : vector<16x1xf32>
    %276 = vector.broadcast %275 : vector<16x1xf32> to vector<16x32xf32>
    %277 = arith.subf %271, %276 : vector<16x32xf32>
    %278 = arith.mulf %277, %277 : vector<16x32xf32>
    %cst_94 = arith.constant dense<0.000000e+00> : vector<16xf32>
    %279 = vector.multi_reduction <add>, %278, %cst_94 [1] : vector<16x32xf32> to vector<16xf32>
    %280 = vector.shape_cast %279 : vector<16xf32> to vector<16x1xf32>
    %cst_95 = arith.constant 3.200000e+01 : f32
    %281 = vector.broadcast %cst_95 : f32 to vector<16x1xf32>
    %282 = arith.divf %280, %281 : vector<16x1xf32>
    %283 = vector.broadcast %275 : vector<16x1xf32> to vector<16x32xf32>
    %284 = arith.subf %271, %283 : vector<16x32xf32>
    %cst_96 = arith.constant 9.99999974E-6 : f32
    %285 = vector.broadcast %cst_96 : f32 to vector<16x1xf32>
    %286 = arith.addf %282, %285 : vector<16x1xf32>
    %287 = math.rsqrt %286 : vector<16x1xf32>
    %288 = vector.broadcast %287 : vector<16x1xf32> to vector<16x32xf32>
    %289 = arith.mulf %284, %288 : vector<16x32xf32>
    %290 = vector.broadcast %10 : vector<1x32xf32> to vector<16x32xf32>
    %291 = arith.mulf %289, %290 : vector<16x32xf32>
    %292 = vector.broadcast %11 : vector<1x32xf32> to vector<16x32xf32>
    %293 = arith.addf %291, %292 : vector<16x32xf32>
    %cst_97 = arith.constant dense<0.000000e+00> : vector<16x64xf32>
    %294 = tpu.matmul %293, %12, %cst_97 {dimension_numbers = #tpu.dot_dimension_numbers<[1], [0], [0], [1], [0, 0, 1, 1], [], []>} : vector<16x32xf32>, vector<32x64xf32>, vector<16x64xf32> -> vector<16x64xf32>
    %295 = vector.broadcast %13 : vector<1x64xf32> to vector<16x64xf32>
    %296 = arith.addf %294, %295 : vector<16x64xf32>
    %cst_98 = arith.constant 0.000000e+00 : f32
    %297 = vector.broadcast %cst_98 : f32 to vector<16x64xf32>
    %298 = arith.maximumf %296, %297 : vector<16x64xf32>
    %cst_99 = arith.constant dense<0.000000e+00> : vector<16x32xf32>
    %299 = tpu.matmul %298, %14, %cst_99 {dimension_numbers = #tpu.dot_dimension_numbers<[1], [0], [0], [1], [0, 0, 1, 1], [], []>} : vector<16x64xf32>, vector<64x32xf32>, vector<16x32xf32> -> vector<16x32xf32>
    %300 = vector.broadcast %15 : vector<1x32xf32> to vector<16x32xf32>
    %301 = arith.addf %299, %300 : vector<16x32xf32>
    %302 = arith.addf %293, %301 : vector<16x32xf32>
    %cst_100 = arith.constant dense<0.000000e+00> : vector<16xf32>
    %303 = vector.multi_reduction <add>, %302, %cst_100 [1] : vector<16x32xf32> to vector<16xf32>
    %304 = vector.shape_cast %303 : vector<16xf32> to vector<16x1xf32>
    %cst_101 = arith.constant 3.200000e+01 : f32
    %305 = vector.broadcast %cst_101 : f32 to vector<16x1xf32>
    %306 = arith.divf %304, %305 : vector<16x1xf32>
    %307 = vector.broadcast %306 : vector<16x1xf32> to vector<16x32xf32>
    %308 = arith.subf %302, %307 : vector<16x32xf32>
    %309 = arith.mulf %308, %308 : vector<16x32xf32>
    %cst_102 = arith.constant dense<0.000000e+00> : vector<16xf32>
    %310 = vector.multi_reduction <add>, %309, %cst_102 [1] : vector<16x32xf32> to vector<16xf32>
    %311 = vector.shape_cast %310 : vector<16xf32> to vector<16x1xf32>
    %cst_103 = arith.constant 3.200000e+01 : f32
    %312 = vector.broadcast %cst_103 : f32 to vector<16x1xf32>
    %313 = arith.divf %311, %312 : vector<16x1xf32>
    %314 = vector.broadcast %306 : vector<16x1xf32> to vector<16x32xf32>
    %315 = arith.subf %302, %314 : vector<16x32xf32>
    %cst_104 = arith.constant 9.99999974E-6 : f32
    %316 = vector.broadcast %cst_104 : f32 to vector<16x1xf32>
    %317 = arith.addf %313, %316 : vector<16x1xf32>
    %318 = math.rsqrt %317 : vector<16x1xf32>
    %319 = vector.broadcast %318 : vector<16x1xf32> to vector<16x32xf32>
    %320 = arith.mulf %315, %319 : vector<16x32xf32>
    %321 = vector.broadcast %16 : vector<1x32xf32> to vector<16x32xf32>
    %322 = arith.mulf %320, %321 : vector<16x32xf32>
    %323 = vector.broadcast %17 : vector<1x32xf32> to vector<16x32xf32>
    %324 = arith.addf %322, %323 : vector<16x32xf32>
    %c0_105 = arith.constant 0 : index
    %c0_106 = arith.constant 0 : index
    %325 = vector.load %arg18[%c0_105, %c0_106] : memref<16x32xf32, #tpu.memory_space<vmem>>, vector<16x32xf32>
    tpu.vector_store %arg18[%c0_105, %c0_106], %324 {strides = array<i32>} : memref<16x32xf32, #tpu.memory_space<vmem>>, vector<16x32xf32>,
    return
  }
}

</mosaic_0001>

<bundles_post_ra>
// kernel: decoder_forward.1
= control target key start
LH: loop header
LB: loop body
LE: loop exit
PB: predicated region body
PF: predicated region fallthrough
CT: control target
= control target key end

     0   :  { %s4267_s0 = inlined_call_operand.vmem [shape: f32[16,32], index: 0, kind: input, shape index: {}]   ;;  %s4268_s1 = inlined_call_operand.vmem [shape: f32[16,16], index: 1, kind: input, shape index: {}]   ;;  %s4269_s2 = inlined_call_operand.vmem [shape: f32[32,32], index: 2, kind: input, shape index: {}]   ;;  %s4270_s3 = inlined_call_operand.vmem [shape: f32[1,32], index: 3, kind: input, shape index: {}]   ;;  %s4271_s4 = inlined_call_operand.vmem [shape: f32[32,32], index: 4, kind: input, shape index: {}]   ;;  %s4272_s5 = inlined_call_operand.vmem [shape: f32[1,32], index: 5, kind: input, shape index: {}]   ;;  %s4273_s6 = inlined_call_operand.vmem [shape: f32[32,32], index: 6, kind: input, shape index: {}]   ;;  %s4274_s7 = inlined_call_operand.vmem [shape: f32[1,32], index: 7, kind: input, shape index: {}]   ;;  %s4275_s8 = inlined_call_operand.vmem [shape: f32[32,32], index: 8, kind: input, shape index: {}]   ;;  %s4276_s9 = inlined_call_operand.vmem [shape: f32[1,32], index: 9, kind: input, shape index: {}]   ;;  %s4277_s10 = inlined_call_operand.vmem [shape: f32[1,32], index: 10, kind: input, shape index: {}]   ;;  %s4278_s11 = inlined_call_operand.vmem [shape: f32[1,32], index: 11, kind: input, shape index: {}]   ;;  %s4279_s12 = inlined_call_operand.vmem [shape: f32[32,64], index: 12, kind: input, shape index: {}]   ;;  %s4280_s13 = inlined_call_operand.vmem [shape: f32[1,64], index: 13, kind: input, shape index: {}]   ;;  %s4281_s14 = inlined_call_operand.vmem [shape: f32[64,32], index: 14, kind: input, shape index: {}]   ;;  %s4282_s15 = inlined_call_operand.vmem [shape: f32[1,32], index: 15, kind: input, shape index: {}]   ;;  %s4283_s16 = inlined_call_operand.vmem [shape: f32[1,32], index: 16, kind: input, shape index: {}]   ;;  %s4284_s17 = inlined_call_operand.vmem [shape: f32[1,32], index: 17, kind: input, shape index: {}]   ;;  %s4285_s18 = inlined_call_operand.hbm [shape: f32[16,32], index: 18, kind: output, shape index: {}]  }
   0x1   :  { %4289 = sst [smem:[#allocation5_spill]] %s4267_s0 }
   0x2   :  { %4290 = sst [smem:[#allocation6_spill]] %s4268_s1 }
   0x3   :  { %4291 = sst [smem:[#allocation7_spill]] %s4269_s2 }
   0x4   :  { %s4292_s29 = sld [smem:[#allocation7_spill]]  ;;  %vm130_vm0 = vcmask 261120   ;;  %v102_v3 = vlaneseq  ;;  %s4293_s23 = sld [smem:[#allocation5_spill]]  ;;  %v69_v8 = vld [vmem:[%s4271_s4] sm:$0xff]  ;;  %v70_v9 = vld [vmem:[%s4271_s4 + $0x8] sm:$0xff] }
   0x5   :  { %v74_v11 = vld [vmem:[%s4273_s6] sm:$0xff]  ;;  %v75_v12 = vld [vmem:[%s4273_s6 + $0x8] sm:$0xff] }
   0x6   :  { %v103_v10 = vand.u32 127, %v102_v3  ;;  %v3750_v13 = vpack.c.bf16 %v75_v12, %v74_v11 }
   0xa   :  { %v64_v0 = vld [vmem:[%s4292_s29] sm:$0xff]  ;;  %v65_v1 = vld [vmem:[%s4292_s29 + $0x8] sm:$0xff]  ;;  %v66_v2 = vld [vmem:[%s4292_s29 + $0x10] sm:$0xff] }
   0xb   :  { %v3720_v4 = vpack.c.bf16 %v65_v1, %v64_v0  ;;  %v67_v5 = vld [vmem:[%s4292_s29 + $0x18] sm:$0xff]  ;;  %v3728_v6 = vld [vmem:[%s4293_s23] sm:$0xff] }
   0xc   :  { %v3730_v7 = vpack.c.bf16 %v67_v5, %v66_v2  ;;  %3048 = vmatprep.mubr.msk.f32.mxu1 %vm130_vm0, %v3728_v6  ;;  %3070 = vmatprep.mubr.msk.f32.mxu0 %vm130_vm0, %v3728_v6 }
   0xd   :  { %3301 = vmatprep.subr.bf16.mxu1 %v3720_v4 }
   0xe   :  { %3303 = vmatpush3.bf16.msra.mxu1 %v3720_v4 }
   0xf   :  { %23 = vsyncpa [#allocation3], 0  ;;  %3305 = vmatprep.subr.bf16.mxu1 %v3730_v7  ;;  %v3753_v14 = vpack.c.bf16 %v70_v9, %v69_v8  ;;  %v71_v15 = vld [vmem:[%s4271_s4 + $0x10] sm:$0xff]  ;;  %v72_v16 = vld [vmem:[%s4271_s4 + $0x18] sm:$0xff]  ;;  %3317 = vmatprep.subr.bf16.mxu0 %v3750_v13  ;;  %vm119_vm1 = vcmp.ge.s32.totalorder %v103_v10, 24  ;;  %vm120_vm2 = vcmp.lt.s32.totalorder %v103_v10, 32 }
  0x10   :  { %3319 = vmatpush3.bf16.msra.mxu0 %v3750_v13  ;;  %v3767_v17 = vld [vmem:[%s4293_s23 + $0x8] sm:$0xff]  ;;  %vm121_vm3 = vmand %vm119_vm1, %vm120_vm2  ;;  %v3770_v18 = vpack.c.bf16 %v72_v16, %v71_v15  ;;  %v3612_v19 = vmov 0.0   ;;  %v76_v21 = vld [vmem:[%s4273_s6 + $0x10] sm:$0xff]  ;;  %vm109_vm4 = vcmp.ge.s32.totalorder %v103_v10, 8  ;;  %vm110_vm5 = vcmp.lt.s32.totalorder %v103_v10, 16  ;;  %s4296_s30 = sld [smem:[#allocation6_spill]] }
  0x11   :  { %v3772_v20 = vsel %vm121_vm3, 1.0, %v3612_v19  ;;  %v77_v22 = vld [vmem:[%s4273_s6 + $0x18] sm:$0xff]  ;;  %vm105_vm6 = vcmp.lt.s32.totalorder %v103_v10, 8  ;;  %vm111_vm7 = vmand %vm109_vm4, %vm110_vm5  ;;  %v3798_v24 = vld [vmem:[%s4270_s3] ss:$0 sm:$0xff]  ;;  %vm114_vm9 = vcmp.ge.s32.totalorder %v103_v10, 16 }
  0x12   :  { %3307 = vmatpush3.bf16.msra.mxu1 %v3730_v7  ;;  %v3789_v23 = vpack.c.bf16 %v77_v22, %v76_v21  ;;  %v3800_v26 = vsel %vm105_vm6, 1.0, %v3612_v19  ;;  %v3802_v27 = vsel %vm111_vm7, 1.0, %v3612_v19  ;;  %v3816_v32 = vld [vmem:[%s4272_s5] ss:$0 sm:$0xff]  ;;  %vm3822_vm8 = vmpackc.low %vm130_vm0, %vm130_vm0  ;;  %vm115_vm10 = vcmp.lt.s32.totalorder %v103_v10, 24 }
  0x13   :  { %3309 = vmatprep.subr.bf16.mxu1 %v3753_v14  ;;  %vm116_vm11 = vmand %vm114_vm9, %vm115_vm10  ;;  %v3866_v45 = vld [vmem:[%s4274_s7] ss:$0 sm:$0xff]  ;;  %vm463_vm12 = vcmask 130048   ;;  %vm1364_vm13 = vcmask 523264  }
  0x14   :  { %3321 = vmatprep.subr.bf16.mxu0 %v3789_v23  ;;  %v3846_v40 = vsel %vm116_vm11, 1.0, %v3612_v19 }
  0x15   :  { %3049 = vmatmul.mubr.msk.f32.vlgmr.msra.gmra.mrb[0].mxu1 %vm130_vm0, %v3767_v17  ;;  %3323 = vmatpush3.bf16.msra.mxu0 %v3789_v23 }
  0x16   :  { %3311 = vmatpush3.bf16.msra.mxu1 %v3753_v14  ;;  %3059 = vmatprep.mubr.msk.f32.mxu1 %vm130_vm0, %v3728_v6  ;;  %v3888_v62 = vld [vmem:[%s4296_s30] sm:$0xff]  ;;  %v3893_v1 = vld [vmem:[%s4296_s30 + $0x8] sm:$0xff] }
  0x17   :  { %3313 = vmatprep.subr.bf16.mxu1 %v3770_v18 }
  0x18   :  { %3071 = vmatmul.mubr.msk.f32.vlgmr.msra.gmra.mrb[0].mxu0 %vm130_vm0, %v3767_v17 }
  0x1a   :  { %3315 = vmatpush3.bf16.msra.mxu1 %v3770_v18 }
  0x1d   :  { %3060 = vmatmul.mubr.msk.f32.vlgmr.msra.gmra.mrb[2].mxu1 %vm130_vm0, %v3767_v17 }
  0xe8   :  { %v3050_v25 = vpop.f32.mrb[0].mxu1 }
  0xe9   :  { %v203_v28 = vpop.f32.mrb[1].mxu1  ;;  %v3841_v39 = vadd.f32 %v3050_v25, %v3798_v24 }
  0xea   :  { %v3805_v29 = vadd.f32 %v3798_v24, %v203_v28 }
  0xeb   :  { %v375_v41 = vmul.f32 %v3800_v26, %v3841_v39  ;;  %v489_v42 = vmul.f32 %v3802_v27, %v3841_v39  ;;  %v758_v44 = vmul.f32 %v3846_v40, %v3841_v39  ;;  %v3072_v46 = vpop.f32.mrb[0].mxu0 }
  0xec   :  { %v374_v30 = vmul.f32 %v3800_v26, %v3805_v29  ;;  %v488_v31 = vmul.f32 %v3802_v27, %v3805_v29  ;;  %v757_v43 = vmul.f32 %v3846_v40, %v3805_v29  ;;  %v371_v47 = vadd.f32 %v3072_v46, %v3866_v45  ;;  %v365_v48 = vpop.f32.mrb[1].mxu0 }
  0xed   :  { %v366_v49 = vadd.f32 %v3866_v45, %v365_v48 }
  0xee   :  { %3077 = vmatprep.mubr.msk.f32.mxu1 %vm130_vm0, %v374_v30  ;;  %3084 = vmatprep.mubr.msk.f32.mxu0 %vm130_vm0, %v488_v31  ;;  %v594_v50 = vmul.f32 %v3802_v27, %v371_v47  ;;  %v487_v54 = vmul.f32 %v3800_v26, %v371_v47  ;;  %v863_v57 = vmul.f32 %v3846_v40, %v371_v47 }
  0xef   :  { %v593_v51 = vmul.f32 %v3802_v27, %v366_v49  ;;  %v486_v53 = vmul.f32 %v3800_v26, %v366_v49  ;;  %v862_v56 = vmul.f32 %v3846_v40, %v366_v49  ;;  %v1052_v58 = vmul.f32 %v3772_v20, %v366_v49 }
  0xf0   :  { %v3061_v33 = vpop.f32.mrb[2].mxu1  ;;  %v1053_v59 = vmul.f32 %v3772_v20, %v371_v47 }
  0xf1   :  { %v290_v34 = vadd.f32 %v3061_v33, %v3816_v32  ;;  %v284_v35 = vpop.f32.mrb[3].mxu1  ;;  %v3336_v52 = vpack.c.bf16 %v594_v50, %v593_v51  ;;  %v3874_v55 = vpack.c.bf16 %v487_v54, %v486_v53  ;;  %v3881_v60 = vpack.c.bf16 %v863_v57, %v862_v56 }
  0xf2   :  { %v285_v36 = vadd.f32 %v3816_v32, %v284_v35  ;;  %v3883_v61 = vpack.c.bf16 %v1053_v59, %v1052_v58 }
  0xf4   :  { %v3826_v38 = vpack.c.bf16 %v290_v34, %v285_v36 }
  0xf6   :  { %3326 = vmatprep.subr.msk.bf16.mxu1 %vm3822_vm8, %v3826_v38  ;;  %3332 = vmatprep.subr.msk.bf16.mxu0 %vm3822_vm8, %v3826_v38 }
  0xf7   :  { %3329 = vmatpush3.bf16.xpose.msk.msra.mxu1 %vm3822_vm8, %v3826_v38  ;;  %3335 = vmatpush3.bf16.xpose.msk.msra.mxu0 %vm3822_vm8, %v3826_v38 }
  0xf8   :  { %3346 = vmatprep.subr.msk.bf16.mxu0 %vm3822_vm8, %v3826_v38  ;;  %3337 = vmatprep.subr.bf16.mxu1 %v3336_v52 }
  0xfe   :  { %3078 = vmatmul.mubr.msk.f32.vlgmr.msra.gmra.mrb[4].mxu1 %vm130_vm0, %v375_v41  ;;  %3085 = vmatmul.mubr.msk.f32.vlgmr.msra.gmra.mrb[2].mxu0 %vm130_vm0, %v489_v42 }
  0xff   :  { %3349 = vmatpush3.bf16.xpose.msk.msra.mxu0 %vm3822_vm8, %v3826_v38  ;;  %3105 = vmatprep.mubr.msk.f32.mxu0 %vm130_vm0, %v757_v43 }
 0x100   :  { %3339 = vmatpush3.bf16.msra.mxu1 %v3336_v52 }
 0x101   :  { %3341 = vmatprep.subr.bf16.mxu1 %v3874_v55 }
 0x106   :  { %3106 = vmatmul.mubr.msk.f32.vlgmr.msra.gmra.mrb[4].mxu0 %vm130_vm0, %v758_v44 }
 0x1d1   :  { %v3079_v63 = vpop.f32.mrb[4].mxu1  ;;  %v3086_v0 = vpop.f32.mrb[2].mxu0 }
 0x1d2   :  { %v454_v2 = vpop.f32.mrb[5].mxu1  ;;  %v562_v3 = vpop.f32.mrb[3].mxu0  ;;  %v460_v9 = vadd.f32 %v3079_v63, %v3893_v1  ;;  %v568_v10 = vadd.f32 %v3086_v0, %v3893_v1 }
 0x1d3   :  { %v455_v5 = vadd.f32 %v454_v2, %v3888_v62  ;;  %v563_v8 = vadd.f32 %v562_v3, %v3888_v62 }
 0x1d4   :  { %v574_v16 = vsel %vm463_vm12, %v568_v10, -inf  ;;  %v467_v19 = vsel %vm463_vm12, %v460_v9, -inf }
 0x1d5   :  { %v571_v11 = vsel %vm463_vm12, %v563_v8, -inf  ;;  %v464_v12 = vsel %vm463_vm12, %v455_v5, -inf }
 0x1d6   :  { %572 = vmax.xlane.f32.xlu0 %v571_v11  ;;  %465 = vmax.xlane.f32.xlu1 %v464_v12 }
 0x1d9   :  { %v3107_v15 = vpop.f32.mrb[4].mxu0 }
 0x1da   :  { %v837_v21 = vadd.f32 %v3107_v15, %v3893_v1  ;;  %v831_v22 = vpop.f32.mrb[5].mxu0  ;;  %575 = vmax.xlane.f32.xlu0 %v574_v16  ;;  %468 = vmax.xlane.f32.xlu1 %v467_v19 }
 0x1db   :  { %v832_v25 = vadd.f32 %v831_v22, %v3888_v62 }
 0x1dc   :  { %v843_v28 = vsel %vm463_vm12, %v837_v21, -inf }
 0x1dd   :  { %v840_v30 = vsel %vm463_vm12, %v832_v25, -inf }
 0x1de   :  { %841 = vmax.xlane.f32.xlu0 %v840_v30  ;;  %844 = vmax.xlane.f32.xlu1 %v843_v28 }
 0x263   :  { %v573_v31 = vpop.xlane.xlu0 %572  ;;  %v466_v33 = vpop.xlane.xlu1 %465 }
 0x264   :  { %v577_v34 = vsub.f32 %v563_v8, %v573_v31  ;;  %v470_v35 = vsub.f32 %v455_v5, %v466_v33 }
 0x266   :  { %v579_v36 = vmul.f32 1.442695, %v577_v34  ;;  %v472_v41 = vmul.f32 1.442695, %v470_v35 }
 0x267   :  { %v576_v42 = vpop.xlane.xlu0 %575  ;;  %v469_v43 = vpop.xlane.xlu1 %468 }
 0x268   :  { %3508 = vpow2.f32 %v579_v36  ;;  %v578_v44 = vsub.f32 %v568_v10, %v576_v42  ;;  %v471_v46 = vsub.f32 %v460_v9, %v469_v43  ;;  %v947_v43 = vmul.f32 %v3772_v20, %v3805_v29 }
 0x269   :  { %3510 = vpow2.f32 %v472_v41 }
 0x26a   :  { %v581_v47 = vmul.f32 1.442695, %v578_v44  ;;  %v474_v48 = vmul.f32 1.442695, %v471_v46 }
 0x26b   :  { %v842_v49 = vpop.xlane.xlu0 %841  ;;  %v845_v50 = vpop.xlane.xlu1 %844 }
 0x26c   :  { %3512 = vpow2.f32 %v581_v47  ;;  %v846_v51 = vsub.f32 %v832_v25, %v842_v49  ;;  %v847_v52 = vsub.f32 %v837_v21, %v845_v50 }
 0x26d   :  { %3514 = vpow2.f32 %v474_v48 }
 0x26e   :  { %v848_v53 = vmul.f32 1.442695, %v846_v51  ;;  %v850_v54 = vmul.f32 1.442695, %v847_v52 }
 0x270   :  { %3516 = vpow2.f32 %v848_v53 }
 0x271   :  { %3518 = vpow2.f32 %v850_v54 }
 0x272   :  { %v3509_v56 = vpop.eup %3508 }
 0x273   :  { %v583_v57 = vsel %vm463_vm12, %v3509_v56, 0.0  ;;  %v3511_v58 = vpop.eup %3510 }
 0x274   :  { %584 = vadd.xlane.f32.xlu0 %v583_v57  ;;  %v476_v0 = vsel %vm463_vm12, %v3511_v58, 0.0 }
 0x276   :  { %v3513_v59 = vpop.eup %3512 }
 0x277   :  { %v586_v63 = vsel %vm463_vm12, %v3513_v59, 0.0  ;;  %v3515_v2 = vpop.eup %3514 }
 0x278   :  { %587 = vadd.xlane.f32.xlu1 %v586_v63  ;;  %477 = vadd.xlane.f32.xlu0 %v476_v0  ;;  %v479_v8 = vsel %vm463_vm12, %v3515_v2, 0.0  ;;  %v81_v63 = vld [vmem:[%s4275_s8 + $0x10] sm:$0xff] }
 0x27a   :  { %v3517_v3 = vpop.eup %3516 }
 0x27b   :  { %v852_v5 = vsel %vm463_vm12, %v3517_v3, 0.0  ;;  %v3519_v9 = vpop.eup %3518 }
 0x27c   :  { %853 = vadd.xlane.f32.xlu0 %v852_v5  ;;  %480 = vadd.xlane.f32.xlu1 %v479_v8  ;;  %v855_v10 = vsel %vm463_vm12, %v3519_v9, 0.0 }
 0x280   :  { %856 = vadd.xlane.f32.xlu1 %v855_v10 }
 0x301   :  { %v585_v11 = vpop.xlane.xlu0 %584 }
 0x302   :  { %3520 = vrcp.f32 %v585_v11 }
 0x305   :  { %v478_v12 = vpop.xlane.xlu0 %477  ;;  %v588_v15 = vpop.xlane.xlu1 %587 }
 0x306   :  { %3522 = vrcp.f32 %v478_v12 }
 0x307   :  { %3524 = vrcp.f32 %v588_v15 }
 0x309   :  { %v481_v16 = vpop.xlane.xlu1 %480  ;;  %v854_v19 = vpop.xlane.xlu0 %853 }
 0x30a   :  { %3526 = vrcp.f32 %v481_v16 }
 0x30b   :  { %3528 = vrcp.f32 %v854_v19  ;;  %v3969_v19 = vld [vmem:[%s4276_s9] ss:$0 sm:$0xff] }
 0x30c   :  { %v3521_v21 = vpop.eup %3520 }
 0x30d   :  { %v591_v22 = vmul.f32 %v3521_v21, %v3509_v56  ;;  %v857_v33 = vpop.xlane.xlu1 %856 }
 0x30e   :  { %3530 = vrcp.f32 %v857_v33 }
 0x30f   :  { %3091 = vmatprep.mubr.msk.f32.mxu1 %vm463_vm12, %v591_v22 }
 0x310   :  { %v3523_v25 = vpop.eup %3522 }
 0x311   :  { %v3525_v28 = vpop.eup %3524  ;;  %v484_v30 = vmul.f32 %v3523_v25, %v3511_v58  ;;  %v79_v58 = vld [vmem:[%s4275_s8] sm:$0xff] }
 0x312   :  { %v592_v31 = vmul.f32 %v3525_v28, %v3513_v59  ;;  %v80_v59 = vld [vmem:[%s4275_s8 + $0x8] sm:$0xff] }
 0x313   :  { %v3951_v0 = vpack.c.bf16 %v80_v59, %v79_v58 }
 0x314   :  { %3092 = vmatmul.mubr.msk.f32.vlgmr.msra.gmra.mrb[6].mxu1 %vm463_vm12, %v592_v31  ;;  %v3527_v34 = vpop.eup %3526 }
 0x315   :  { %3343 = vmatpush3.bf16.msra.mxu1 %v3874_v55  ;;  %3098 = vmatprep.mubr.msk.f32.mxu1 %vm463_vm12, %v484_v30  ;;  %v3529_v35 = vpop.eup %3528  ;;  %v485_v36 = vmul.f32 %v3527_v34, %v3515_v2  ;;  %v82_v2 = vld [vmem:[%s4275_s8 + $0x18] sm:$0xff] }
 0x316   :  { %3351 = vmatprep.subr.bf16.mxu1 %v3881_v60  ;;  %v860_v41 = vmul.f32 %v3529_v35, %v3517_v3  ;;  %v3956_v3 = vpack.c.bf16 %v82_v2, %v81_v63  ;;  %3365 = vmatprep.subr.bf16.mxu0 %v3951_v0 }
 0x317   :  { %3367 = vmatpush3.bf16.msra.mxu0 %v3951_v0 }
 0x318   :  { %v3531_v42 = vpop.eup %3530  ;;  %3369 = vmatprep.subr.bf16.mxu0 %v3956_v3 }
 0x319   :  { %v861_v55 = vmul.f32 %v3531_v42, %v3519_v9 }
 0x31b   :  { %3371 = vmatpush3.bf16.msra.mxu0 %v3956_v3 }
 0x31c   :  { %3099 = vmatmul.mubr.msk.f32.vlgmr.msra.gmra.mrb[6].mxu1 %vm463_vm12, %v485_v36 }
 0x31d   :  { %3353 = vmatpush3.bf16.msra.mxu1 %v3881_v60  ;;  %3112 = vmatprep.mubr.msk.f32.mxu1 %vm463_vm12, %v860_v41  ;;  %v948_v60 = vmul.f32 %v3772_v20, %v3841_v39 }
 0x31e   :  { %3356 = vmatprep.subr.msk.bf16.mxu1 %vm3822_vm8, %v3826_v38 }
 0x324   :  { %3113 = vmatmul.mubr.msk.f32.vlgmr.msra.gmra.mrb[6].mxu1 %vm463_vm12, %v861_v55 }
 0x325   :  { %3119 = vmatprep.mubr.msk.f32.mxu1 %vm130_vm0, %v947_v43 }
 0x326   :  { %3359 = vmatpush3.bf16.xpose.msk.msra.mxu1 %vm3822_vm8, %v3826_v38 }
 0x327   :  { %3361 = vmatprep.subr.bf16.mxu1 %v3883_v61 }
 0x32d   :  { %3120 = vmatmul.mubr.msk.f32.vlgmr.msra.gmra.mrb[8].mxu1 %vm130_vm0, %v948_v60 }
 0x32e   :  { %3363 = vmatpush3.bf16.msra.mxu1 %v3883_v61 }
 0x400   :  { %v3121_v44 = vpop.f32.mrb[8].mxu1 }
 0x401   :  { %v1027_v29 = vadd.f32 %v3121_v44, %v3893_v1  ;;  %v1021_v46 = vpop.f32.mrb[9].mxu1 }
 0x402   :  { %v1022_v47 = vadd.f32 %v1021_v46, %v3888_v62  ;;  %v87_v46 = vld [vmem:[%s4279_s12 + $0x8] sm:$0xff] }
 0x403   :  { %v1033_v48 = vsel %vm463_vm12, %v1027_v29, -inf }
 0x404   :  { %1034 = vmax.xlane.f32.xlu1 %v1033_v48  ;;  %v1030_v38 = vsel %vm463_vm12, %v1022_v47, -inf  ;;  %v88_v48 = vld [vmem:[%s4279_s12 + $0x10] sm:$0xff] }
 0x405   :  { %1031 = vmax.xlane.f32.xlu0 %v1030_v38  ;;  %v89_v38 = vld [vmem:[%s4279_s12 + $0x18] sm:$0xff] }
 0x491   :  { %v1035_v49 = vpop.xlane.xlu1 %1034 }
 0x492   :  { %v1037_v50 = vsub.f32 %v1027_v29, %v1035_v49  ;;  %v1032_v51 = vpop.xlane.xlu0 %1031  ;;  %v3995_v49 = vpack.c.bf16 %v89_v38, %v88_v48 }
 0x493   :  { %v1036_v39 = vsub.f32 %v1022_v47, %v1032_v51  ;;  %v92_v51 = vld [vmem:[%s4281_s14 + $0x8] sm:$0xff] }
 0x494   :  { %v1040_v52 = vmul.f32 1.442695, %v1037_v50  ;;  %v91_v50 = vld [vmem:[%s4281_s14] sm:$0xff] }
 0x495   :  { %v1038_v53 = vmul.f32 1.442695, %v1036_v39  ;;  %v93_v39 = vld [vmem:[%s4281_s14 + $0x10] sm:$0xff] }
 0x496   :  { %3532 = vpow2.f32 %v1040_v52  ;;  %v4009_v52 = vpack.c.bf16 %v92_v51, %v91_v50 }
 0x497   :  { %3534 = vpow2.f32 %v1038_v53  ;;  %v94_v53 = vld [vmem:[%s4281_s14 + $0x18] sm:$0xff] }
 0x498   :  { %3381 = vmatprep.subr.bf16.mxu1 %v4009_v52 }
 0x4a0   :  { %v3533_v61 = vpop.eup %3532 }
 0x4a1   :  { %v3535_v54 = vpop.eup %3534  ;;  %v1045_v56 = vsel %vm463_vm12, %v3533_v61, 0.0 }
 0x4a2   :  { %1046 = vadd.xlane.f32.xlu1 %v1045_v56  ;;  %v1042_v57 = vsel %vm463_vm12, %v3535_v54, 0.0  ;;  %v96_v56 = vld [vmem:[%s4281_s14 + $0x28] sm:$0xff] }
 0x4a3   :  { %1043 = vadd.xlane.f32.xlu0 %v1042_v57 }
 0x52f   :  { %v1047_v5 = vpop.xlane.xlu1 %1046 }
 0x530   :  { %3536 = vrcp.f32 %v1047_v5  ;;  %v1044_v8 = vpop.xlane.xlu0 %1043 }
 0x531   :  { %3538 = vrcp.f32 %v1044_v8 }
 0x53a   :  { %v3537_v9 = vpop.eup %3536 }
 0x53b   :  { %v3539_v10 = vpop.eup %3538  ;;  %v1051_v12 = vmul.f32 %v3537_v9, %v3533_v61  ;;  %v4014_v61 = vpack.c.bf16 %v94_v53, %v93_v39 }
 0x53c   :  { %v1050_v11 = vmul.f32 %v3539_v10, %v3535_v54  ;;  %v95_v54 = vld [vmem:[%s4281_s14 + $0x20] sm:$0xff] }
 0x53d   :  { %v4025_v57 = vpack.c.bf16 %v96_v56, %v95_v54  ;;  %v4033_v10 = vld [vmem:[%s4277_s10] ss:$0 sm:$0xff] }
 0x53e   :  { %3126 = vmatprep.mubr.msk.f32.mxu1 %vm463_vm12, %v1050_v11 }
 0x53f   :  { %3127 = vmatmul.mubr.msk.f32.vlgmr.msra.gmra.mrb[6].mxu1 %vm463_vm12, %v1051_v12 }
 0x540   :  { %3383 = vmatpush3.bf16.msra.mxu1 %v4009_v52 }
 0x541   :  { %3385 = vmatprep.subr.bf16.mxu1 %v4014_v61 }
 0x544   :  { %3387 = vmatpush3.bf16.msra.mxu1 %v4014_v61 }
 0x545   :  { %3389 = vmatprep.subr.bf16.mxu1 %v4025_v57 }
 0x548   :  { %3391 = vmatpush3.bf16.msra.mxu1 %v4025_v57 }
 0x612   :  { %v3128_v15 = vpop.f32.mrb[6].mxu1 }
 0x613   :  { %v1126_v16 = vpop.f32.mrb[7].mxu1 }
 0x614   :  { %3137 = vmatprep.mubr.msk.f32.mxu0 %vm130_vm0, %v1126_v16  ;;  %v4038_v16 = vld [vmem:[%s4278_s11] ss:$0 sm:$0xff] }
 0x615   :  { %3138 = vmatmul.mubr.msk.f32.vlgmr.msra.gmra.mrb[6].mxu0 %vm130_vm0, %v3128_v15 }
 0x6e8   :  { %v3139_v21 = vpop.f32.mrb[6].mxu0 }
 0x6e9   :  { %v1221_v22 = vadd.f32 %v3139_v21, %v3969_v19  ;;  %v1215_v25 = vpop.f32.mrb[7].mxu0 }
 0x6ea   :  { %v1216_v28 = vadd.f32 %v3969_v19, %v1215_v25 }
 0x6eb   :  { %v1225_v30 = vadd.f32 %v1221_v22, %v3767_v17 }
 0x6ec   :  { %v1224_v31 = vadd.f32 %v1216_v28, %v3728_v6  ;;  %v86_v6 = vld [vmem:[%s4279_s12] sm:$0xff] }
 0x6ed   :  { %v1229_v33 = vsel %vm130_vm0, %v1225_v30, 0.0  ;;  %v3985_v47 = vpack.c.bf16 %v87_v46, %v86_v6 }
 0x6ee   :  { %1230 = vadd.xlane.f32.xlu1 %v1229_v33  ;;  %v1226_v34 = vsel %vm130_vm0, %v1224_v31, 0.0 }
 0x6ef   :  { %1227 = vadd.xlane.f32.xlu0 %v1226_v34  ;;  %3373 = vmatprep.subr.bf16.mxu0 %v3985_v47 }
 0x6f0   :  { %3375 = vmatpush3.bf16.msra.mxu0 %v3985_v47 }
 0x6f1   :  { %3377 = vmatprep.subr.bf16.mxu0 %v3995_v49 }
 0x6f4   :  { %3379 = vmatpush3.bf16.msra.mxu0 %v3995_v49 }
 0x6f5   :  { %3397 = vmatprep.subr.bf16.mxu0 %v3720_v4 }
 0x77b   :  { %v1231_v35 = vpop.xlane.xlu1 %1230 }
 0x77c   :  { %v1234_v36 = vmul.f32 0.03125, %v1231_v35  ;;  %v1228_v41 = vpop.xlane.xlu0 %1227 }
 0x77d   :  { %v1233_v42 = vmul.f32 0.03125, %v1228_v41 }
 0x77e   :  { %v1236_v55 = vsub.f32 %v1225_v30, %v1234_v36  ;;  %v97_v30 = vld [vmem:[%s4281_s14 + $0x30] sm:$0xff] }
 0x77f   :  { %v1235_v43 = vsub.f32 %v1224_v31, %v1233_v42  ;;  %v98_v31 = vld [vmem:[%s4281_s14 + $0x38] sm:$0xff] }
 0x780   :  { %v1238_v60 = vmul.f32 %v1236_v55, %v1236_v55  ;;  %v4056_v33 = vpack.c.bf16 %v98_v31, %v97_v30 }
 0x781   :  { %v1237_v44 = vmul.f32 %v1235_v43, %v1235_v43 }
 0x782   :  { %v1242_v29 = vsel %vm130_vm0, %v1238_v60, 0.0  ;;  %3393 = vmatprep.subr.bf16.mxu1 %v4056_v33 }
 0x783   :  { %1243 = vadd.xlane.f32.xlu1 %v1242_v29  ;;  %v1239_v17 = vsel %vm130_vm0, %v1237_v44, 0.0  ;;  %3395 = vmatpush3.bf16.msra.mxu1 %v4056_v33 }
 0x784   :  { %1240 = vadd.xlane.f32.xlu0 %v1239_v17  ;;  %3413 = vmatprep.subr.bf16.mxu1 %v3750_v13 }
 0x810   :  { %v1244_v58 = vpop.xlane.xlu1 %1243 }
 0x811   :  { %v1246_v59 = vmul.f32 0.03125, %v1244_v58  ;;  %v1241_v63 = vpop.xlane.xlu0 %1240 }
 0x812   :  { %v1245_v2 = vmul.f32 0.03125, %v1241_v63 }
 0x813   :  { %v1248_v5 = vadd.f32 1e-05, %v1246_v59 }
 0x814   :  { %v1247_v8 = vadd.f32 1e-05, %v1245_v2 }
 0x815   :  { %3540 = vrsqrt.f32 %v1248_v5 }
 0x816   :  { %3542 = vrsqrt.f32 %v1247_v8 }
 0x81f   :  { %v3541_v9 = vpop.eup %3540 }
 0x820   :  { %v3543_v11 = vpop.eup %3542  ;;  %v1252_v12 = vmul.f32 %v3541_v9, %v1236_v55  ;;  %v4076_v55 = vld [vmem:[%s4282_s15] ss:$0 sm:$0xff] }
 0x821   :  { %v1251_v15 = vmul.f32 %v3543_v11, %v1235_v43 }
 0x822   :  { %v1260_v21 = vmul.f32 %v4033_v10, %v1252_v12  ;;  %v4087_v12 = vld [vmem:[%s4283_s16] ss:$0 sm:$0xff]  ;;  %s3613_s16 = smov [#allocation2]  }
 0x823   :  { %v1259_v22 = vmul.f32 %v4033_v10, %v1251_v15 }
 0x824   :  { %v1268_v28 = vadd.f32 %v4038_v16, %v1260_v21 }
 0x825   :  { %v1267_v25 = vadd.f32 %v4038_v16, %v1259_v22 }
 0x827   :  { %3148 = vmatprep.mubr.msk.f32.mxu0 %vm130_vm0, %v1267_v25 }
 0x828   :  { %3149 = vmatmul.mubr.msk.f32.vlgmr.msra.gmra.mrb[8].mxu0 %vm130_vm0, %v1268_v28 }
 0x829   :  { %3399 = vmatpush3.bf16.msra.mxu0 %v3720_v4  ;;  %v4064_v4 = vld [vmem:[%s4280_s13] ss:$0 sm:$0xff] }
 0x82a   :  { %3401 = vmatprep.subr.bf16.mxu0 %v3730_v7 }
 0x82d   :  { %3403 = vmatpush3.bf16.msra.mxu0 %v3730_v7 }
 0x82e   :  { %3405 = vmatprep.subr.bf16.mxu0 %v3753_v14 }
 0x8fb   :  { %v3150_v7 = vpop.f32.mrb[8].mxu0 }
 0x8fc   :  { %v1353_v34 = vadd.f32 %v3150_v7, %v4064_v4  ;;  %v1347_v35 = vpop.f32.mrb[9].mxu0 }
 0x8fd   :  { %v1348_v36 = vadd.f32 %v4064_v4, %v1347_v35 }
 0x8fe   :  { %v1357_v42 = vmax.f32 %v1353_v34, 0.0 }
 0x8ff   :  { %v1356_v41 = vmax.f32 %v1348_v36, 0.0 }
 0x901   :  { %3167 = vmatprep.mubr.msk.f32.mxu1 %vm1364_vm13, %v1356_v41 }
 0x902   :  { %3168 = vmatmul.mubr.msk.f32.vlgmr.msra.gmra.mrb[10].mxu1 %vm1364_vm13, %v1357_v42 }
 0x903   :  { %3415 = vmatpush3.bf16.msra.mxu1 %v3750_v13 }
 0x904   :  { %3417 = vmatprep.subr.bf16.mxu1 %v3789_v23 }
 0x907   :  { %3419 = vmatpush3.bf16.msra.mxu1 %v3789_v23 }
 0x9d5   :  { %v3169_v43 = vpop.f32.mrb[10].mxu1 }
 0x9d6   :  { %v1443_v60 = vadd.f32 %v3169_v43, %v4076_v55  ;;  %v1437_v44 = vpop.f32.mrb[11].mxu1 }
 0x9d7   :  { %v1438_v29 = vadd.f32 %v4076_v55, %v1437_v44 }
 0x9d8   :  { %v1447_v17 = vadd.f32 %v1443_v60, %v1268_v28 }
 0x9d9   :  { %v1446_v6 = vadd.f32 %v1438_v29, %v1267_v25  ;;  %v4092_v25 = vld [vmem:[%s4284_s17] ss:$0 sm:$0xff]  ;;  %s2799_s17 = sshll.u32 %s3613_s16, 4  ;;  %s2800_s17 = int_to_ptr.vmem [resolvable:$true] %s2799_s17 }
 0x9da   :  { %v1451_v46 = vsel %vm130_vm0, %v1447_v17, 0.0  ;;  %s3588_s29 = scalar_lea.vmem %s2800_s17, 256  ;;  %p3593_p1 = scmp.lt.s32.totalorder %s2800_s17, %s2800_s17 }
 0x9db   :  { %1452 = vadd.xlane.f32.xlu1 %v1451_v46  ;;  %v1448_v13 = vsel %vm130_vm0, %v1446_v6, 0.0  ;;  %p3589_p0 = scmp.ne.s32.totalorder %s2800_s17, %s3588_s29  ;;  %p3594_p2 = scmp.lt.s32.totalorder %s3588_s29, %s3588_s29 }
 0x9dc   :  { %1449 = vadd.xlane.f32.xlu0 %v1448_v13 }
 0x9dd   :  { %p3595_p3 = por %p3594_p2, %p3593_p1 }
 0x9df   :  { %p3596_p4 = pnand %p3595_p3, %p3589_p0 }
 0xa68   :  { %v1453_v23 = vpop.xlane.xlu1 %1452 }
 0xa69   :  { %v1455_v48 = vmul.f32 0.03125, %v1453_v23  ;;  %v1450_v38 = vpop.xlane.xlu0 %1449 }
 0xa6a   :  { %v1454_v50 = vmul.f32 0.03125, %v1450_v38 }
 0xa6b   :  { %v1457_v51 = vsub.f32 %v1447_v17, %v1455_v48 }
 0xa6c   :  { %v1456_v39 = vsub.f32 %v1446_v6, %v1454_v50 }
 0xa6d   :  { %v1459_v53 = vmul.f32 %v1457_v51, %v1457_v51 }
 0xa6e   :  { %v1458_v54 = vmul.f32 %v1456_v39, %v1456_v39 }
 0xa6f   :  { %v1463_v56 = vsel %vm130_vm0, %v1459_v53, 0.0 }
 0xa70   :  { %1464 = vadd.xlane.f32.xlu1 %v1463_v56  ;;  %v1460_v58 = vsel %vm130_vm0, %v1458_v54, 0.0 }
 0xa71   :  { %1461 = vadd.xlane.f32.xlu0 %v1460_v58 }
 0xafd   :  { %v1465_v59 = vpop.xlane.xlu1 %1464 }
 0xafe   :  { %v1467_v63 = vmul.f32 0.03125, %v1465_v59  ;;  %v1462_v2 = vpop.xlane.xlu0 %1461 }
 0xaff   :  { %v1466_v5 = vmul.f32 0.03125, %v1462_v2 }
 0xb00   :  { %v1469_v8 = vadd.f32 1e-05, %v1467_v63 }
 0xb01   :  { %v1468_v9 = vadd.f32 1e-05, %v1466_v5 }
 0xb02   :  { %3544 = vrsqrt.f32 %v1469_v8 }
 0xb03   :  { %3546 = vrsqrt.f32 %v1468_v9 }
 0xb0c   :  { %v3545_v11 = vpop.eup %3544 }
 0xb0d   :  { %v3547_v15 = vpop.eup %3546  ;;  %v1473_v21 = vmul.f32 %v3545_v11, %v1457_v51 }
 0xb0e   :  { %v1472_v22 = vmul.f32 %v3547_v15, %v1456_v39 }
 0xb0f   :  { %v1481_v28 = vmul.f32 %v4087_v12, %v1473_v21 }
 0xb10   :  { %v1480_v30 = vmul.f32 %v4087_v12, %v1472_v22 }
 0xb11   :  { %v4100_v7 = vadd.f32 %v4092_v25, %v1481_v28 }
 0xb12   :  { %v4097_v31 = vadd.f32 %v4092_v25, %v1480_v30 }
 0xb14   :  { %3178 = vmatprep.mubr.msk.f32.mxu0 %vm130_vm0, %v4097_v31  ;;  %3200 = vmatprep.mubr.msk.f32.mxu1 %vm130_vm0, %v4097_v31 }
 0xb15   :  { %3179 = vmatmul.mubr.msk.f32.vlgmr.msra.gmra.mrb[10].mxu0 %vm130_vm0, %v4100_v7  ;;  %3201 = vmatmul.mubr.msk.f32.vlgmr.msra.gmra.mrb[12].mxu1 %vm130_vm0, %v4100_v7 }
 0xb16   :  { %3407 = vmatpush3.bf16.msra.mxu0 %v3753_v14  ;;  %3189 = vmatprep.mubr.msk.f32.mxu0 %vm130_vm0, %v4097_v31 }
 0xb17   :  { %3409 = vmatprep.subr.bf16.mxu0 %v3770_v18 }
 0xb1a   :  { %3411 = vmatpush3.bf16.msra.mxu0 %v3770_v18 }
 0xb1d   :  { %3190 = vmatmul.mubr.msk.f32.vlgmr.msra.gmra.mrb[12].mxu0 %vm130_vm0, %v4100_v7 }
 0xbe8   :  { %v3180_v34 = vpop.f32.mrb[10].mxu0  ;;  %v3202_v35 = vpop.f32.mrb[12].mxu1 }
 0xbe9   :  { %v1718_v36 = vadd.f32 %v3202_v35, %v3866_v45  ;;  %v1562_v41 = vpop.f32.mrb[11].mxu0  ;;  %v1712_v42 = vpop.f32.mrb[13].mxu1  ;;  %v1568_v59 = vadd.f32 %v3180_v34, %v3798_v24 }
 0xbea   :  { %v1563_v43 = vadd.f32 %v3798_v24, %v1562_v41  ;;  %v1713_v14 = vadd.f32 %v3866_v45, %v1712_v42 }
 0xbeb   :  { %v1940_v18 = vmul.f32 %v3802_v27, %v1718_v36  ;;  %v1833_v6 = vmul.f32 %v3800_v26, %v1718_v36  ;;  %v2209_v45 = vmul.f32 %v3846_v40, %v1718_v36  ;;  %v2399_v38 = vmul.f32 %v3772_v20, %v1718_v36 }
 0xbec   :  { %v1721_v60 = vmul.f32 %v3800_v26, %v1563_v43  ;;  %v1834_v44 = vmul.f32 %v3802_v27, %v1563_v43  ;;  %v1939_v29 = vmul.f32 %v3802_v27, %v1713_v14  ;;  %v1832_v17 = vmul.f32 %v3800_v26, %v1713_v14 }
 0xbed   :  { %v2208_v13 = vmul.f32 %v3846_v40, %v1713_v14  ;;  %v2398_v48 = vmul.f32 %v3772_v20, %v1713_v14  ;;  %v1835_v63 = vmul.f32 %v3802_v27, %v1568_v59  ;;  %v2103_v2 = vmul.f32 %v3846_v40, %v1563_v43 }
 0xbee   :  { %3207 = vmatprep.mubr.msk.f32.mxu0 %vm130_vm0, %v1721_v60  ;;  %3214 = vmatprep.mubr.msk.f32.mxu1 %vm130_vm0, %v1834_v44  ;;  %v3432_v46 = vpack.c.bf16 %v1940_v18, %v1939_v29  ;;  %v4130_v23 = vpack.c.bf16 %v1833_v6, %v1832_v17  ;;  %v2104_v24 = vmul.f32 %v3846_v40, %v1568_v59 }
 0xbef   :  { %v4134_v51 = vpack.c.bf16 %v2209_v45, %v2208_v13  ;;  %v4137_v54 = vpack.c.bf16 %v2399_v38, %v2398_v48  ;;  %v2294_v27 = vmul.f32 %v3772_v20, %v1568_v59 }
 0xbf0   :  { %v3191_v50 = vpop.f32.mrb[12].mxu0 }
 0xbf1   :  { %v1643_v39 = vadd.f32 %v3191_v50, %v3816_v32  ;;  %v1637_v53 = vpop.f32.mrb[13].mxu0 }
 0xbf2   :  { %v1638_v56 = vadd.f32 %v3816_v32, %v1637_v53  ;;  %v1722_v32 = vmul.f32 %v3800_v26, %v1568_v59  ;;  %v2293_v26 = vmul.f32 %v3772_v20, %v1563_v43 }
 0xbf4   :  { %v3420_v58 = vpack.c.bf16 %v1643_v39, %v1638_v56 }
 0xbf6   :  { %3422 = vmatprep.subr.msk.bf16.mxu0 %vm3822_vm8, %v3420_v58  ;;  %3428 = vmatprep.subr.msk.bf16.mxu1 %vm3822_vm8, %v3420_v58 }
 0xbf7   :  { %3425 = vmatpush3.bf16.xpose.msk.msra.mxu0 %vm3822_vm8, %v3420_v58  ;;  %3431 = vmatpush3.bf16.xpose.msk.msra.mxu1 %vm3822_vm8, %v3420_v58 }
 0xbf8   :  { %3433 = vmatprep.subr.bf16.mxu0 %v3432_v46  ;;  %3442 = vmatprep.subr.msk.bf16.mxu1 %vm3822_vm8, %v3420_v58 }
 0xbfe   :  { %3208 = vmatmul.mubr.msk.f32.vlgmr.msra.gmra.mrb[14].mxu0 %vm130_vm0, %v1722_v32  ;;  %3215 = vmatmul.mubr.msk.f32.vlgmr.msra.gmra.mrb[14].mxu1 %vm130_vm0, %v1835_v63 }
 0xbff   :  { %3435 = vmatpush3.bf16.msra.mxu0 %v3432_v46  ;;  %3445 = vmatpush3.bf16.xpose.msk.msra.mxu1 %vm3822_vm8, %v3420_v58 }
 0xc00   :  { %3235 = vmatprep.mubr.msk.f32.mxu1 %vm130_vm0, %v2103_v2  ;;  %3437 = vmatprep.subr.bf16.mxu0 %v4130_v23 }
 0xc01   :  { %3452 = vmatprep.subr.msk.bf16.mxu1 %vm3822_vm8, %v3420_v58 }
 0xc06   :  { %3236 = vmatmul.mubr.msk.f32.vlgmr.msra.gmra.mrb[16].mxu1 %vm130_vm0, %v2104_v24 }
 0xc07   :  { %3455 = vmatpush3.bf16.xpose.msk.msra.mxu1 %vm3822_vm8, %v3420_v58  ;;  %3249 = vmatprep.mubr.msk.f32.mxu1 %vm130_vm0, %v2293_v26 }
 0xc08   :  { %3469 = vmatprep.subr.bf16.mxu1 %v3985_v47 }
 0xc0e   :  { %3250 = vmatmul.mubr.msk.f32.vlgmr.msra.gmra.mrb[18].mxu1 %vm130_vm0, %v2294_v27 }
 0xc0f   :  { %3471 = vmatpush3.bf16.msra.mxu1 %v3985_v47 }
 0xc10   :  { %3473 = vmatprep.subr.bf16.mxu1 %v3995_v49 }
 0xc13   :  { %3475 = vmatpush3.bf16.msra.mxu1 %v3995_v49 }
 0xcd1   :  { %v3209_v40 = vpop.f32.mrb[14].mxu0  ;;  %v3216_v5 = vpop.f32.mrb[14].mxu1 }
 0xcd2   :  { %v1914_v8 = vadd.f32 %v3216_v5, %v3893_v1  ;;  %v1801_v37 = vpop.f32.mrb[15].mxu0  ;;  %v1908_v9 = vpop.f32.mrb[15].mxu1  ;;  %v1807_v15 = vadd.f32 %v3209_v40, %v3893_v1 }
 0xcd3   :  { %v1909_v11 = vadd.f32 %v1908_v9, %v3888_v62  ;;  %v1802_v21 = vadd.f32 %v1801_v37, %v3888_v62 }
 0xcd4   :  { %v1920_v20 = vsel %vm463_vm12, %v1914_v8, -inf  ;;  %v1813_v49 = vsel %vm463_vm12, %v1807_v15, -inf }
 0xcd5   :  { %1921 = vmax.xlane.f32.xlu1 %v1920_v20  ;;  %v1917_v47 = vsel %vm463_vm12, %v1909_v11, -inf  ;;  %v1810_v28 = vsel %vm463_vm12, %v1802_v21, -inf }
 0xcd6   :  { %1918 = vmax.xlane.f32.xlu0 %v1917_v47 }
 0xcd9   :  { %v3237_v22 = vpop.f32.mrb[16].mxu1  ;;  %1814 = vmax.xlane.f32.xlu1 %v1813_v49 }
 0xcda   :  { %v2183_v30 = vadd.f32 %v3237_v22, %v3893_v1  ;;  %v2177_v34 = vpop.f32.mrb[17].mxu1  ;;  %1811 = vmax.xlane.f32.xlu0 %v1810_v28 }
 0xcdb   :  { %v2178_v35 = vadd.f32 %v2177_v34, %v3888_v62 }
 0xcdc   :  { %v2189_v36 = vsel %vm463_vm12, %v2183_v30, -inf }
 0xcdd   :  { %2190 = vmax.xlane.f32.xlu1 %v2189_v36  ;;  %v2186_v41 = vsel %vm463_vm12, %v2178_v35, -inf }
 0xcde   :  { %2187 = vmax.xlane.f32.xlu0 %v2186_v41 }
 0xce1   :  { %v3251_v42 = vpop.f32.mrb[18].mxu1 }
 0xce2   :  { %v2373_v43 = vadd.f32 %v3251_v42, %v3893_v1  ;;  %v2367_v14 = vpop.f32.mrb[19].mxu1 }
 0xce3   :  { %v2368_v60 = vadd.f32 %v2367_v14, %v3888_v62 }
 0xce4   :  { %v2379_v44 = vsel %vm463_vm12, %v2373_v43, -inf }
 0xce5   :  { %2380 = vmax.xlane.f32.xlu1 %v2379_v44  ;;  %v2376_v29 = vsel %vm463_vm12, %v2368_v60, -inf }
 0xce6   :  { %2377 = vmax.xlane.f32.xlu0 %v2376_v29 }
 0xd62   :  { %v1922_v18 = vpop.xlane.xlu1 %1921 }
 0xd63   :  { %v1924_v17 = vsub.f32 %v1914_v8, %v1922_v18  ;;  %v1919_v6 = vpop.xlane.xlu0 %1918 }
 0xd64   :  { %v1923_v46 = vsub.f32 %v1909_v11, %v1919_v6 }
 0xd65   :  { %v1927_v13 = vmul.f32 1.442695, %v1924_v17 }
 0xd66   :  { %v1925_v45 = vmul.f32 1.442695, %v1923_v46  ;;  %v1815_v48 = vpop.xlane.xlu1 %1814 }
 0xd67   :  { %3548 = vpow2.f32 %v1927_v13  ;;  %v1817_v38 = vsub.f32 %v1807_v15, %v1815_v48  ;;  %v1812_v50 = vpop.xlane.xlu0 %1811 }
 0xd68   :  { %3550 = vpow2.f32 %v1925_v45  ;;  %v1816_v1 = vsub.f32 %v1802_v21, %v1812_v50 }
 0xd69   :  { %v1820_v39 = vmul.f32 1.442695, %v1817_v38 }
 0xd6a   :  { %v1818_v62 = vmul.f32 1.442695, %v1816_v1  ;;  %v2191_v53 = vpop.xlane.xlu1 %2190 }
 0xd6b   :  { %3552 = vpow2.f32 %v1820_v39  ;;  %v2193_v56 = vsub.f32 %v2183_v30, %v2191_v53  ;;  %v2188_v58 = vpop.xlane.xlu0 %2187 }
 0xd6c   :  { %3554 = vpow2.f32 %v1818_v62  ;;  %v2192_v59 = vsub.f32 %v2178_v35, %v2188_v58 }
 0xd6d   :  { %v2196_v32 = vmul.f32 1.442695, %v2193_v56 }
 0xd6e   :  { %v2194_v63 = vmul.f32 1.442695, %v2192_v59 }
 0xd6f   :  { %3556 = vpow2.f32 %v2196_v32 }
 0xd70   :  { %3558 = vpow2.f32 %v2194_v63 }
 0xd71   :  { %v3549_v2 = vpop.eup %3548 }
 0xd72   :  { %v3551_v24 = vpop.eup %3550  ;;  %v2381_v26 = vpop.xlane.xlu1 %2380  ;;  %v1932_v27 = vsel %vm463_vm12, %v3549_v2, 0.0 }
 0xd73   :  { %v2383_v40 = vsub.f32 %v2373_v43, %v2381_v26  ;;  %1933 = vadd.xlane.f32.xlu1 %v1932_v27  ;;  %v2378_v5 = vpop.xlane.xlu0 %2377  ;;  %v1929_v8 = vsel %vm463_vm12, %v3551_v24, 0.0 }
 0xd74   :  { %v2382_v37 = vsub.f32 %v2368_v60, %v2378_v5  ;;  %1930 = vadd.xlane.f32.xlu0 %v1929_v8 }
 0xd75   :  { %v3553_v9 = vpop.eup %3552  ;;  %v2386_v11 = vmul.f32 1.442695, %v2383_v40 }
 0xd76   :  { %v3555_v15 = vpop.eup %3554  ;;  %v2384_v20 = vmul.f32 1.442695, %v2382_v37  ;;  %v1825_v21 = vsel %vm463_vm12, %v3553_v9, 0.0 }
 0xd77   :  { %3560 = vpow2.f32 %v2386_v11  ;;  %1826 = vadd.xlane.f32.xlu1 %v1825_v21  ;;  %v1822_v47 = vsel %vm463_vm12, %v3555_v15, 0.0 }
 0xd78   :  { %3562 = vpow2.f32 %v2384_v20  ;;  %1823 = vadd.xlane.f32.xlu0 %v1822_v47 }
 0xd79   :  { %v3557_v49 = vpop.eup %3556 }
 0xd7a   :  { %v3559_v22 = vpop.eup %3558  ;;  %v2201_v28 = vsel %vm463_vm12, %v3557_v49, 0.0 }
 0xd7b   :  { %2202 = vadd.xlane.f32.xlu1 %v2201_v28  ;;  %v2198_v30 = vsel %vm463_vm12, %v3559_v22, 0.0 }
 0xd7c   :  { %2199 = vadd.xlane.f32.xlu0 %v2198_v30 }
 0xd81   :  { %v3561_v34 = vpop.eup %3560 }
 0xd82   :  { %v3563_v35 = vpop.eup %3562  ;;  %v2391_v36 = vsel %vm463_vm12, %v3561_v34, 0.0 }
 0xd83   :  { %2392 = vadd.xlane.f32.xlu1 %v2391_v36  ;;  %v2388_v41 = vsel %vm463_vm12, %v3563_v35, 0.0 }
 0xd84   :  { %2389 = vadd.xlane.f32.xlu0 %v2388_v41 }
 0xe00   :  { %v1934_v42 = vpop.xlane.xlu1 %1933 }
 0xe01   :  { %3564 = vrcp.f32 %v1934_v42  ;;  %v1931_v43 = vpop.xlane.xlu0 %1930 }
 0xe02   :  { %3566 = vrcp.f32 %v1931_v43 }
 0xe04   :  { %v1827_v60 = vpop.xlane.xlu1 %1826 }
 0xe05   :  { %v1824_v14 = vpop.xlane.xlu0 %1823 }
 0xe06   :  { %3568 = vrcp.f32 %v1824_v14 }
 0xe07   :  { %3570 = vrcp.f32 %v1827_v60 }
 0xe08   :  { %v2203_v46 = vpop.xlane.xlu1 %2202 }
 0xe09   :  { %v2200_v44 = vpop.xlane.xlu0 %2199 }
 0xe0a   :  { %3572 = vrcp.f32 %v2200_v44 }
 0xe0b   :  { %v3565_v29 = vpop.eup %3564  ;;  %3574 = vrcp.f32 %v2203_v46 }
 0xe0c   :  { %v3567_v18 = vpop.eup %3566  ;;  %v1938_v6 = vmul.f32 %v3565_v29, %v3549_v2 }
 0xe0d   :  { %v1937_v17 = vmul.f32 %v3567_v18, %v3551_v24 }
 0xe0f   :  { %3221 = vmatprep.mubr.msk.f32.mxu0 %vm463_vm12, %v1937_v17 }
 0xe10   :  { %v3569_v13 = vpop.eup %3568  ;;  %3222 = vmatmul.mubr.msk.f32.vlgmr.msra.gmra.mrb[16].mxu0 %vm463_vm12, %v1938_v6  ;;  %v2393_v39 = vpop.xlane.xlu1 %2392 }
 0xe11   :  { %3439 = vmatpush3.bf16.msra.mxu0 %v4130_v23  ;;  %v2390_v45 = vpop.xlane.xlu0 %2389  ;;  %v1830_v48 = vmul.f32 %v3569_v13, %v3555_v15  ;;  %v3571_v38 = vpop.eup %3570 }
 0xe12   :  { %3447 = vmatprep.subr.bf16.mxu0 %v4134_v51  ;;  %3576 = vrcp.f32 %v2390_v45  ;;  %v1831_v1 = vmul.f32 %v3571_v38, %v3553_v9 }
 0xe13   :  { %3228 = vmatprep.mubr.msk.f32.mxu0 %vm463_vm12, %v1830_v48  ;;  %3578 = vrcp.f32 %v2393_v39 }
 0xe14   :  { %v3573_v50 = vpop.eup %3572 }
 0xe15   :  { %v2206_v62 = vmul.f32 %v3573_v50, %v3559_v22  ;;  %v3575_v23 = vpop.eup %3574 }
 0xe16   :  { %v2207_v56 = vmul.f32 %v3575_v23, %v3557_v49 }
 0xe18   :  { %3229 = vmatmul.mubr.msk.f32.vlgmr.msra.gmra.mrb[16].mxu0 %vm463_vm12, %v1831_v1 }
 0xe19   :  { %3449 = vmatpush3.bf16.msra.mxu0 %v4134_v51  ;;  %3242 = vmatprep.mubr.msk.f32.mxu0 %vm463_vm12, %v2206_v62 }
 0xe1a   :  { %3457 = vmatprep.subr.bf16.mxu0 %v4137_v54 }
 0xe1c   :  { %v3577_v53 = vpop.eup %3576 }
 0xe1d   :  { %v2396_v58 = vmul.f32 %v3577_v53, %v3563_v35  ;;  %v3579_v59 = vpop.eup %3578 }
 0xe1e   :  { %v2397_v32 = vmul.f32 %v3579_v59, %v3561_v34 }
 0xe20   :  { %3243 = vmatmul.mubr.msk.f32.vlgmr.msra.gmra.mrb[16].mxu0 %vm463_vm12, %v2207_v56 }
 0xe21   :  { %3459 = vmatpush3.bf16.msra.mxu0 %v4137_v54  ;;  %3256 = vmatprep.mubr.msk.f32.mxu0 %vm463_vm12, %v2396_v58 }
 0xe22   :  { %3461 = vmatprep.subr.bf16.mxu0 %v3951_v0 }
 0xe28   :  { %3257 = vmatmul.mubr.msk.f32.vlgmr.msra.gmra.mrb[16].mxu0 %vm463_vm12, %v2397_v32 }
 0xe29   :  { %3463 = vmatpush3.bf16.msra.mxu0 %v3951_v0 }
 0xe2a   :  { %3465 = vmatprep.subr.bf16.mxu0 %v3956_v3 }
 0xe2d   :  { %3467 = vmatpush3.bf16.msra.mxu0 %v3956_v3 }
 0xe2e   :  { %3477 = vmatprep.subr.bf16.mxu0 %v4009_v52 }
 0xefb   :  { %v3258_v51 = vpop.f32.mrb[16].mxu0 }
 0xefc   :  { %v2472_v63 = vpop.f32.mrb[17].mxu0 }
 0xefd   :  { %3267 = vmatprep.mubr.msk.f32.mxu0 %vm130_vm0, %v2472_v63 }
 0xefe   :  { %3268 = vmatmul.mubr.msk.f32.vlgmr.msra.gmra.mrb[18].mxu0 %vm130_vm0, %v3258_v51 }
 0xeff   :  { %3479 = vmatpush3.bf16.msra.mxu0 %v4009_v52 }
 0xf00   :  { %3481 = vmatprep.subr.bf16.mxu0 %v4014_v61 }
 0xf03   :  { %3483 = vmatpush3.bf16.msra.mxu0 %v4014_v61 }
 0xf04   :  { %3485 = vmatprep.subr.bf16.mxu0 %v4025_v57 }
 0xf07   :  { %3487 = vmatpush3.bf16.msra.mxu0 %v4025_v57 }
 0xf08   :  { %3489 = vmatprep.subr.bf16.mxu0 %v4056_v33 }
 0xf0b   :  { %3491 = vmatpush3.bf16.msra.mxu0 %v4056_v33 }
 0xfd1   :  { %v3269_v0 = vpop.f32.mrb[18].mxu0 }
 0xfd2   :  { %v2561_v3 = vadd.f32 %v3269_v0, %v3969_v19  ;;  %v2555_v54 = vpop.f32.mrb[19].mxu0 }
 0xfd3   :  { %v2556_v2 = vadd.f32 %v3969_v19, %v2555_v54 }
 0xfd4   :  { %v2565_v52 = vadd.f32 %v2561_v3, %v4100_v7 }
 0xfd5   :  { %v2564_v24 = vadd.f32 %v2556_v2, %v4097_v31 }
 0xfd6   :  { %v2569_v61 = vsel %vm130_vm0, %v2565_v52, 0.0 }
 0xfd7   :  { %2570 = vadd.xlane.f32.xlu1 %v2569_v61  ;;  %v2566_v26 = vsel %vm130_vm0, %v2564_v24, 0.0 }
 0xfd8   :  { %2567 = vadd.xlane.f32.xlu0 %v2566_v26 }
0x1064   :  { %v2571_v57 = vpop.xlane.xlu1 %2570 }
0x1065   :  { %v2573_v27 = vmul.f32 0.03125, %v2571_v57  ;;  %v2568_v40 = vpop.xlane.xlu0 %2567 }
0x1066   :  { %v2572_v33 = vmul.f32 0.03125, %v2568_v40 }
0x1067   :  { %v2575_v5 = vsub.f32 %v2565_v52, %v2573_v27 }
0x1068   :  { %v2574_v8 = vsub.f32 %v2564_v24, %v2572_v33 }
0x1069   :  { %v2577_v37 = vmul.f32 %v2575_v5, %v2575_v5 }
0x106a   :  { %v2576_v9 = vmul.f32 %v2574_v8, %v2574_v8 }
0x106b   :  { %v2581_v19 = vsel %vm130_vm0, %v2577_v37, 0.0 }
0x106c   :  { %2582 = vadd.xlane.f32.xlu1 %v2581_v19  ;;  %v2578_v7 = vsel %vm130_vm0, %v2576_v9, 0.0 }
0x106d   :  { %2579 = vadd.xlane.f32.xlu0 %v2578_v7 }
0x10f9   :  { %v2583_v31 = vpop.xlane.xlu1 %2582 }
0x10fa   :  { %v2585_v11 = vmul.f32 0.03125, %v2583_v31  ;;  %v2580_v15 = vpop.xlane.xlu0 %2579 }
0x10fb   :  { %v2584_v20 = vmul.f32 0.03125, %v2580_v15 }
0x10fc   :  { %v2587_v21 = vadd.f32 1e-05, %v2585_v11 }
0x10fd   :  { %v2586_v47 = vadd.f32 1e-05, %v2584_v20 }
0x10fe   :  { %3580 = vrsqrt.f32 %v2587_v21 }
0x10ff   :  { %3582 = vrsqrt.f32 %v2586_v47 }
0x1108   :  { %v3581_v49 = vpop.eup %3580 }
0x1109   :  { %v3583_v22 = vpop.eup %3582  ;;  %v2591_v28 = vmul.f32 %v3581_v49, %v2575_v5 }
0x110a   :  { %v2590_v30 = vmul.f32 %v3583_v22, %v2574_v8 }
0x110b   :  { %v2593_v34 = vmul.f32 %v4033_v10, %v2591_v28 }
0x110c   :  { %v2592_v35 = vmul.f32 %v4033_v10, %v2590_v30 }
0x110d   :  { %v2595_v41 = vadd.f32 %v4038_v16, %v2593_v34 }
0x110e   :  { %v2594_v36 = vadd.f32 %v4038_v16, %v2592_v35 }
0x1110   :  { %3278 = vmatprep.mubr.msk.f32.mxu1 %vm130_vm0, %v2594_v36 }
0x1111   :  { %3279 = vmatmul.mubr.msk.f32.vlgmr.msra.gmra.mrb[20].mxu1 %vm130_vm0, %v2595_v41 }
0x11e4   :  { %v3280_v42 = vpop.f32.mrb[20].mxu1 }
0x11e5   :  { %v2674_v43 = vadd.f32 %v3280_v42, %v4064_v4  ;;  %v2668_v14 = vpop.f32.mrb[21].mxu1 }
0x11e6   :  { %v2669_v60 = vadd.f32 %v4064_v4, %v2668_v14 }
0x11e7   :  { %v2678_v29 = vmax.f32 %v2674_v43, 0.0 }
0x11e8   :  { %v2677_v44 = vmax.f32 %v2669_v60, 0.0 }
0x11ea   :  { %3297 = vmatprep.mubr.msk.f32.mxu0 %vm1364_vm13, %v2677_v44 }
0x11eb   :  { %3298 = vmatmul.mubr.msk.f32.vlgmr.msra.gmra.mrb[20].mxu0 %vm1364_vm13, %v2678_v29 }
0x12be   :  { %v3299_v10 = vpop.f32.mrb[20].mxu0 }
0x12bf   :  { %v2757_v18 = vadd.f32 %v3299_v10, %v4076_v55  ;;  %v2751_v16 = vpop.f32.mrb[21].mxu0 }
0x12c0   :  { %v2752_v17 = vadd.f32 %v4076_v55, %v2751_v16 }
0x12c1   :  { %v2761_v6 = vadd.f32 %v2757_v18, %v2595_v41 }
0x12c2   :  { %v2760_v46 = vadd.f32 %v2752_v17, %v2594_v36 }
0x12c3   :  { %v2765_v13 = vsel %vm130_vm0, %v2761_v6, 0.0 }
0x12c4   :  { %2766 = vadd.xlane.f32.xlu1 %v2765_v13  ;;  %v2762_v45 = vsel %vm130_vm0, %v2760_v46, 0.0 }
0x12c5   :  { %2763 = vadd.xlane.f32.xlu0 %v2762_v45 }
0x1351   :  { %v2767_v4 = vpop.xlane.xlu1 %2766 }
0x1352   :  { %v2769_v48 = vmul.f32 0.03125, %v2767_v4  ;;  %v2764_v38 = vpop.xlane.xlu0 %2763 }
0x1353   :  { %v2768_v50 = vmul.f32 0.03125, %v2764_v38 }
0x1354   :  { %v2771_v1 = vsub.f32 %v2761_v6, %v2769_v48 }
0x1355   :  { %v2770_v39 = vsub.f32 %v2760_v46, %v2768_v50 }
0x1356   :  { %v2773_v62 = vmul.f32 %v2771_v1, %v2771_v1 }
0x1357   :  { %v2772_v23 = vmul.f32 %v2770_v39, %v2770_v39 }
0x1358   :  { %v2777_v53 = vsel %vm130_vm0, %v2773_v62, 0.0 }
0x1359   :  { %2778 = vadd.xlane.f32.xlu1 %v2777_v53  ;;  %v2774_v55 = vsel %vm130_vm0, %v2772_v23, 0.0 }
0x135a   :  { %2775 = vadd.xlane.f32.xlu0 %v2774_v55 }
0x13e6   :  { %v2779_v56 = vpop.xlane.xlu1 %2778 }
0x13e7   :  { %v2781_v58 = vmul.f32 0.03125, %v2779_v56  ;;  %v2776_v59 = vpop.xlane.xlu0 %2775 }
0x13e8   :  { %v2780_v32 = vmul.f32 0.03125, %v2776_v59 }
0x13e9   :  { %v2783_v51 = vadd.f32 1e-05, %v2781_v58 }
0x13ea   :  { %v2782_v63 = vadd.f32 1e-05, %v2780_v32 }
0x13eb   :  { %3584 = vrsqrt.f32 %v2783_v51 }
0x13ec   :  { %3586 = vrsqrt.f32 %v2782_v63 }
0x13f5   :  { %v3585_v0 = vpop.eup %3584 }
0x13f6   :  { %v3587_v3 = vpop.eup %3586  ;;  %v2787_v54 = vmul.f32 %v3585_v0, %v2771_v1 }
0x13f7   :  { %v2786_v2 = vmul.f32 %v3587_v3, %v2770_v39 }
0x13f8   :  { %v2789_v52 = vmul.f32 %v4087_v12, %v2787_v54 }
0x13f9   :  { %v2788_v24 = vmul.f32 %v4087_v12, %v2786_v2 }
0x13fa   :  { %v2791_v61 = vadd.f32 %v4092_v25, %v2789_v52 }
0x13fb   :  { %v2790_v26 = vadd.f32 %v4092_v25, %v2788_v24 }
0x13fc   :  { %2793 = vst.msk [vmem:[#allocation2 + $0x8] sm:$0xff] %vm130_vm0, %v2791_v61 }
0x13fd   :  { %2792 = vst.msk [vmem:[#allocation2] sm:$0xff] %vm130_vm0, %v2790_v26 }
0x13fe   :  { %3599 = shalt.err (!%p3596_p4)
}
0x13ff   :  { %s3600_s19 = scalar_lea.hbm %s4285_s18, 256 }
0x1400   :  { %p3601_p5 = scmp.ne.s32.totalorder %s4285_s18, %s3600_s19  ;;  %p3604_p6 = scmp.lt.u32.totalorder %s3600_s19, %s4285_s18 }
0x1402   :  { %p3606_p7 = pnand %p3604_p6, %p3601_p5 }
0x1404   :  { %3609 = shalt.err (!%p3606_p7)
}
0x1405   :  { %s3614_s22 = smov 128   ;;  %s3615_s2 = smov 8  }
0x1406   :  { %2805 = dma.vmem_to_hbm [thread:$0]  %s2800_s17, 256, %s4285_s18, [#allocation3], %s3614_s22, %s3614_s22, %s3615_s2  }
0x1407   :  { %3610 = dma.done.wait [#allocation3], 256  }
0x1408   :  { %3611 = vsyncadd [#allocation3], 4294967040 }
0x1409   :  { %2809 = vsyncpa [#allocation3], 1 }

</bundles_post_ra>
